<compile_context>
chip_gen: v7x
topology: tpu7x:2x2x1
jax: 0.10.0
libtpu: 0.0.40
codegen_flags: <defaults>
</compile_context>

<pallas_src>
import jax
import jax.numpy as jnp
from jax import lax
from jax.experimental import pallas as pl
from jax.experimental.pallas import tpu as pltpu


DEFAULT_TB = 1024   # batch tile; multiple of 8 (f32 sublane tile)


def _round_up(n, m):
    return ((n + m - 1) // m) * m


def _linear_kernel(x_ref, w_ref, o_ref):
    # x_ref: (TB, 784)  f32 batch tile in VMEM
    # w_ref: (784, 10)  f32 transposed PyTorch weight (resident: constant index_map)
    # o_ref: (TB, 10)   f32 output tile (narrow, masked stores — negligible traffic)
    o_ref[...] = jnp.dot(
        x_ref[...],
        w_ref[...],
        preferred_element_type=jnp.float32,
        precision=lax.Precision.HIGHEST,   # match PyTorch f32 numerics
    )


def mnist_linear_forward(x_nchw, weight, *, tb=DEFAULT_TB):
    """Forward pass of MNIST_linear.

    x_nchw: (B, 1, 28, 28) float32  (NCHW, like PyTorch)
    weight: (10, 784) float32       (PyTorch nn.Linear weight layout)
    returns: (B, 10) float32
    """
    B = x_nchw.shape[0]
    out_features, in_features = weight.shape  # (10, 784)

    # nn.Flatten: (B, 1, 28, 28) -> (B, 784)  (glue, plain JAX)
    x_flat = x_nchw.reshape(B, in_features)

    # One-time 31 KiB wrapper transpose: K (784) on sublanes, N (10) on lanes.
    w_t = weight.astype(jnp.float32).T  # (784, 10)

    # Batch tile: multiple of 8; capped at ~B/2 so the grid has >=2 steps when
    # B >= 16 (lets v7x shard the "parallel" axis across its two TensorCores;
    # harmless on single-TC v5e/v6e).
    tb_eff = max(8, min(tb, _round_up(pl.cdiv(B, 2), 8)))
    grid = (pl.cdiv(B, tb_eff),)  # ragged last block: Pallas masks it (no jnp.pad copy)

    cost = pl.CostEstimate(
        flops=2 * B * in_features * out_features,
        transcendentals=0,
        bytes_accessed=4 * (B * in_features + in_features * out_features
                            + B * out_features),
    )

    out = pl.pallas_call(
        _linear_kernel,
        out_shape=jax.ShapeDtypeStruct((B, out_features), jnp.float32),
        grid_spec=pltpu.PrefetchScalarGridSpec(
            num_scalar_prefetch=0,
            grid=grid,
            in_specs=[
                # x: one batch tile per grid step (double-buffered, overlaps MXU).
                pl.BlockSpec((tb_eff, in_features), lambda i: (i, 0)),
                # weight: same block every step -> stays resident in VMEM.
                pl.BlockSpec((in_features, out_features), lambda i: (0, 0)),
            ],
            out_specs=pl.BlockSpec((tb_eff, out_features), lambda i: (i, 0)),
        ),
        compiler_params=pltpu.CompilerParams(
            dimension_semantics=("parallel",),
            # TB=1024 (~9 MiB incl. double-buffering) fits every generation's
            # default scoped VMEM; raise vmem_limit_bytes before sweeping TB
            # past ~1024 on v5e / ~2048 on v7x.
        ),
        cost_estimate=cost,
    )(x_flat, w_t)

    return out  # already (B, 10): no wrapper slice pass


if __name__ == "__main__":
    key = jax.random.PRNGKey(0)
    k_x, k_w = jax.random.split(key)

    # Small, MNIST-consistent shapes: batch=8, NCHW image (1, 28, 28) -> 784 features.
    B = 8
    x = jax.random.normal(k_x, (B, 1, 28, 28), dtype=jnp.float32)
    # Deterministic weight init, matching re_init()'s nn.init.normal_ semantics.
    weight = jax.random.normal(k_w, (10, 784), dtype=jnp.float32)

    y = mnist_linear_forward(x, weight)
    y = jax.block_until_ready(y)

    # Sanity check against a plain-JAX reference at matching (full f32) precision.
    ref = jnp.dot(x.reshape(B, 784), weight.T, precision=lax.Precision.HIGHEST)
    assert y.shape == (B, 10)
    assert jnp.allclose(y, ref, atol=1e-3, rtol=1e-4)

    print("KERNEL_OK")
</pallas_src>

<mosaic_0001>
module attributes {stable_mosaic.version = 11 : i64} {
  func.func @_linear_kernel(%arg0: i32, %arg1: memref<8x784xf32, #tpu.memory_space<vmem>>, %arg2: memref<784x10xf32, #tpu.memory_space<vmem>>, %arg3: memref<8x10xf32, #tpu.memory_space<vmem>>) attributes {dimension_semantics = [#tpu.dimension_semantics<parallel>], iteration_bounds = array<i64: 1>, scalar_prefetch = 0 : i64, scratch_operands = 0 : i64, tpu.core_type = #tpu.core_type<tc>, window_params = [{transform_indices = @transform_0, window_bounds = array<i64: 8, 784>}, {pipeline_mode = #tpu.pipeline_mode<synchronous>, transform_indices = @transform_1, window_bounds = array<i64: 784, 10>}, {transform_indices = @transform_2, window_bounds = array<i64: 8, 10>}]} {
    %c0 = arith.constant 0 : index
    %c0_0 = arith.constant 0 : index
    %0 = vector.load %arg1[%c0, %c0_0] : memref<8x784xf32, #tpu.memory_space<vmem>>, vector<8x784xf32>
    %c0_1 = arith.constant 0 : index
    %c0_2 = arith.constant 0 : index
    %1 = vector.load %arg2[%c0_1, %c0_2] : memref<784x10xf32, #tpu.memory_space<vmem>>, vector<784x10xf32>
    %cst = arith.constant dense<0.000000e+00> : vector<8x10xf32>
    %2 = tpu.matmul %0, %1, %cst {dimension_numbers = #tpu.dot_dimension_numbers<[1], [0], [0], [1], [0, 0, 1, 1], [], []>, precision = #tpu.contract_precision<fp32>} : vector<8x784xf32>, vector<784x10xf32>, vector<8x10xf32> -> vector<8x10xf32>
    %c0_3 = arith.constant 0 : index
    %c0_4 = arith.constant 0 : index
    %3 = vector.load %arg3[%c0_3, %c0_4] : memref<8x10xf32, #tpu.memory_space<vmem>>, vector<8x10xf32>
    tpu.vector_store %arg3[%c0_3, %c0_4], %2 {strides = array<i32>} : memref<8x10xf32, #tpu.memory_space<vmem>>, vector<8x10xf32>,
    return
  }
  func.func @transform_0(%arg0: i32) -> (i32, i32) {
    %c0_i32 = arith.constant 0 : i32
    %c0_i32_0 = arith.constant 0 : i32
    return %arg0, %c0_i32 : i32, i32
  }
  func.func @transform_1(%arg0: i32) -> (i32, i32) {
    %c0_i32 = arith.constant 0 : i32
    %c0_i32_0 = arith.constant 0 : i32
    %c0_i32_1 = arith.constant 0 : i32
    return %c0_i32, %c0_i32_0 : i32, i32
  }
  func.func @transform_2(%arg0: i32) -> (i32, i32) {
    %c0_i32 = arith.constant 0 : i32
    %c0_i32_0 = arith.constant 0 : i32
    return %arg0, %c0_i32 : i32, i32
  }
}

</mosaic_0001>

<bundles_post_ra>
// kernel: tpu_custom_call.1
= control target key start
LH: loop header
LB: loop body
LE: loop exit
PB: predicated region body
PF: predicated region fallthrough
CT: control target
= control target key end

     0   :  { %s6180_s0 = inlined_call_operand.vmem [shape: f32[8,784], index: 0, kind: input, shape index: {}]   ;;  %s6181_s1 = inlined_call_operand.vmem [shape: f32[784,10], index: 1, kind: input, shape index: {}]   ;;  %s6182_s2 = inlined_call_operand.hbm [shape: f32[8,10], index: 2, kind: output, shape index: {}]  }
   0x1   :  { %v35_v0 = vld [vmem:[%s6181_s1 + $0x80] sm:$0xff]  ;;  %v36_v1 = vld [vmem:[%s6181_s1 + $0x88] sm:$0xff]  ;;  %v37_v7 = vld [vmem:[%s6181_s1 + $0x90] sm:$0xff] }
   0x2   :  { %v19_v2 = vld [vmem:[%s6181_s1] sm:$0xff]  ;;  %v170_v3 = vand.u32 4294901760, %v35_v0  ;;  %v173_v4 = vand.u32 4294901760, %v36_v1  ;;  %v20_v5 = vld [vmem:[%s6181_s1 + $0x8] sm:$0xff]  ;;  %v38_v8 = vld [vmem:[%s6181_s1 + $0x98] sm:$0xff]  ;;  %v176_v10 = vand.u32 4294901760, %v37_v7 }
   0x3   :  { %v122_v6 = vand.u32 4294901760, %v19_v2  ;;  %v125_v9 = vand.u32 4294901760, %v20_v5  ;;  %v179_v11 = vand.u32 4294901760, %v38_v8  ;;  %v21_v12 = vld [vmem:[%s6181_s1 + $0x10] sm:$0xff]  ;;  %v22_v13 = vld [vmem:[%s6181_s1 + $0x18] sm:$0xff]  ;;  %v39_v18 = vld [vmem:[%s6181_s1 + $0xa0] sm:$0xff] }
   0x4   :  { %v4547_v14 = vpack.c.bf16 %v173_v4, %v170_v3  ;;  %v128_v16 = vand.u32 4294901760, %v21_v12  ;;  %v131_v17 = vand.u32 4294901760, %v22_v13  ;;  %v40_v19 = vld [vmem:[%s6181_s1 + $0xa8] sm:$0xff]  ;;  %v23_v23 = vld [vmem:[%s6181_s1 + $0x20] sm:$0xff]  ;;  %v4570_v25 = vsub.f32 %v37_v7, %v176_v10  ;;  %v41_v37 = vld [vmem:[%s6181_s1 + $0xb0] sm:$0xff] }
   0x5   :  { %v4549_v15 = vsub.f32 %v19_v2, %v122_v6  ;;  %v4557_v20 = vpack.c.bf16 %v125_v9, %v122_v6  ;;  %v4559_v21 = vsub.f32 %v20_v5, %v125_v9  ;;  %v4561_v22 = vpack.c.bf16 %v179_v11, %v176_v10  ;;  %v24_v24 = vld [vmem:[%s6181_s1 + $0x28] sm:$0xff]  ;;  %v42_v42 = vld [vmem:[%s6181_s1 + $0xb8] sm:$0xff]  ;;  %v25_v55 = vld [vmem:[%s6181_s1 + $0x30] sm:$0xff] }
   0x6   :  { %3873 = vmatprep.subr.bf16.mxu0 %v4547_v14  ;;  %v4572_v26 = vsub.f32 %v38_v8, %v179_v11  ;;  %v4574_v27 = vpack.c.bf16 %v131_v17, %v128_v16  ;;  %v4576_v28 = vsub.f32 %v21_v12, %v128_v16  ;;  %v182_v29 = vand.u32 4294901760, %v39_v18  ;;  %v26_v56 = vld [vmem:[%s6181_s1 + $0x38] sm:$0xff]  ;;  %v43_v5 = vld [vmem:[%s6181_s1 + $0xc0] sm:$0xff]  ;;  %v44_v6 = vld [vmem:[%s6181_s1 + $0xc8] sm:$0xff] }
   0x7   :  { %3875 = vmatpush3.bf16.msra.mxu0 %v4557_v20  ;;  %v185_v30 = vand.u32 4294901760, %v40_v19  ;;  %v4579_v31 = vsub.f32 %v35_v0, %v170_v3  ;;  %v4581_v32 = vsub.f32 %v36_v1, %v173_v4  ;;  %v134_v33 = vand.u32 4294901760, %v23_v23  ;;  %v27_v11 = vld [vmem:[%s6181_s1 + $0x40] sm:$0xff] }
   0x8   :  { %3877 = vmatprep.subr.bf16.mxu0 %v4561_v22  ;;  %v137_v34 = vand.u32 4294901760, %v24_v24  ;;  %v6199_v35 = vand.u32 4294901760, %v4549_v15  ;;  %v6198_v36 = vand.u32 4294901760, %v4559_v21  ;;  %v4589_v38 = vsub.f32 %v22_v13, %v131_v17 }
   0x9   :  { %v4591_v39 = vpack.c.bf16 %v185_v30, %v182_v29  ;;  %v4593_v40 = vsub.f32 %v39_v18, %v182_v29  ;;  %v6204_v41 = vand.u32 4294901760, %v4579_v31  ;;  %v4599_v43 = vsub.f32 %v40_v19, %v185_v30  ;;  %v28_v29 = vld [vmem:[%s6181_s1 + $0x48] sm:$0xff] }
   0xa   :  { %v6201_v44 = vand.u32 4294901760, %v4581_v32  ;;  %v4602_v45 = vpack.c.bf16 %v137_v34, %v134_v33  ;;  %v4604_v46 = vsub.f32 %v23_v23, %v134_v33  ;;  %v237_v48 = vsub.f32 %v4549_v15, %v6199_v35 }
   0xb   :  { %3879 = vmatpush3.bf16.msra.mxu0 %v4574_v27  ;;  %v349_v47 = vsub.f32 %v4579_v31, %v6204_v41  ;;  %v244_v49 = vsub.f32 %v4559_v21, %v6198_v36  ;;  %v188_v50 = vand.u32 4294901760, %v41_v37  ;;  %v191_v52 = vand.u32 4294901760, %v42_v42 }
   0xc   :  { %3881 = vmatprep.subr.bf16.mxu0 %v4591_v39  ;;  %v356_v51 = vsub.f32 %v4581_v32, %v6201_v44  ;;  %v6196_v53 = vand.u32 4294901760, %v4570_v25  ;;  %v6195_v54 = vand.u32 4294901760, %v4572_v26  ;;  %v4628_v58 = vsub.f32 %v24_v24, %v137_v34 }
   0xd   :  { %v350_v57 = vand.u32 4294901760, %v349_v47  ;;  %v238_v59 = vand.u32 4294901760, %v237_v48  ;;  %v245_v60 = vand.u32 4294901760, %v244_v49  ;;  %v4630_v62 = vpack.c.bf16 %v191_v52, %v188_v50 }
   0xe   :  { %v357_v61 = vand.u32 4294901760, %v356_v51  ;;  %v4632_v63 = vsub.f32 %v41_v37, %v188_v50  ;;  %v363_v0 = vsub.f32 %v4570_v25, %v6196_v53  ;;  %v370_v2 = vsub.f32 %v4572_v26, %v6195_v54 }
   0xf   :  { %3883 = vmatpush3.bf16.msra.mxu0 %v4602_v45  ;;  %v3906_v1 = vpack.c.bf16 %v245_v60, %v238_v59  ;;  %v140_v3 = vand.u32 4294901760, %v25_v55  ;;  %v143_v4 = vand.u32 4294901760, %v26_v56  ;;  %v6194_v9 = vand.u32 4294901760, %v4576_v28 }
  0x10   :  { %v3904_v7 = vpack.c.bf16 %v357_v61, %v350_v57  ;;  %3885 = vmatprep.subr.bf16.mxu0 %v4630_v62  ;;  %v364_v8 = vand.u32 4294901760, %v363_v0  ;;  %v6191_v10 = vand.u32 4294901760, %v4589_v38  ;;  %v4653_v12 = vsub.f32 %v42_v42, %v191_v52  ;;  %v46_v57 = vld [vmem:[%s6181_s1 + $0xd8] sm:$0xff] }
  0x11   :  { %v371_v13 = vand.u32 4294901760, %v370_v2  ;;  %v4655_v16 = vpack.c.bf16 %v143_v4, %v140_v3  ;;  %v4657_v17 = vsub.f32 %v25_v55, %v140_v3  ;;  %v251_v18 = vsub.f32 %v4576_v28, %v6194_v9 }
  0x12   :  { %3905 = vmatprep.subr.bf16.mxu1 %v3904_v7  ;;  %v258_v19 = vsub.f32 %v4589_v38, %v6191_v10  ;;  %v194_v23 = vand.u32 4294901760, %v43_v5  ;;  %v197_v24 = vand.u32 4294901760, %v44_v6  ;;  %v6189_v33 = vand.u32 4294901760, %v4593_v40 }
  0x13   :  { %3907 = vmatpush3.bf16.msra.mxu1 %v3906_v1  ;;  %v3908_v30 = vpack.c.bf16 %v371_v13, %v364_v8  ;;  %3887 = vmatpush3.bf16.msra.mxu0 %v4655_v16  ;;  %v6188_v34 = vand.u32 4294901760, %v4599_v43  ;;  %v146_v37 = vand.u32 4294901760, %v27_v11  ;;  %v4671_v42 = vsub.f32 %v26_v56, %v143_v4  ;;  %v45_v56 = vld [vmem:[%s6181_s1 + $0xd0] sm:$0xff] }
  0x14   :  { %v252_v47 = vand.u32 4294901760, %v251_v18  ;;  %v259_v48 = vand.u32 4294901760, %v258_v19  ;;  %v4673_v49 = vpack.c.bf16 %v197_v24, %v194_v23  ;;  %v4675_v50 = vsub.f32 %v43_v5, %v194_v23  ;;  %v29_v1 = vld [vmem:[%s6181_s1 + $0x50] sm:$0xff]  ;;  %v30_v18 = vld [vmem:[%s6181_s1 + $0x58] sm:$0xff] }
  0x15   :  { %3909 = vmatprep.subr.bf16.mxu1 %v3908_v30  ;;  %v377_v51 = vsub.f32 %v4593_v40, %v6189_v33  ;;  %v384_v52 = vsub.f32 %v4599_v43, %v6188_v34  ;;  %v149_v55 = vand.u32 4294901760, %v28_v29  ;;  %v4690_v60 = vsub.f32 %v44_v6, %v197_v24 }
  0x16   :  { %v3910_v59 = vpack.c.bf16 %v259_v48, %v252_v47  ;;  %3889 = vmatprep.subr.bf16.mxu0 %v4673_v49  ;;  %v6186_v61 = vand.u32 4294901760, %v4604_v46  ;;  %v6185_v0 = vand.u32 4294901760, %v4628_v58  ;;  %v4699_v5 = vsub.f32 %v27_v11, %v146_v37 }
  0x17   :  { %v378_v2 = vand.u32 4294901760, %v377_v51  ;;  %v385_v3 = vand.u32 4294901760, %v384_v52  ;;  %v4697_v4 = vpack.c.bf16 %v149_v55, %v146_v37  ;;  %v200_v8 = vand.u32 4294901760, %v45_v56 }
  0x18   :  { %3911 = vmatpush3.bf16.msra.mxu1 %v3910_v59  ;;  %v265_v6 = vsub.f32 %v4604_v46, %v6186_v61  ;;  %v272_v7 = vsub.f32 %v4628_v58, %v6185_v0  ;;  %v203_v13 = vand.u32 4294901760, %v46_v57 }
  0x19   :  { %7 = vsyncpa [#allocation3], 0  ;;  %v3912_v19 = vpack.c.bf16 %v385_v3, %v378_v2  ;;  %3891 = vmatpush3.bf16.msra.mxu0 %v4697_v4  ;;  %v6184_v11 = vand.u32 4294901760, %v4632_v63  ;;  %v6183_v23 = vand.u32 4294901760, %v4653_v12  ;;  %v152_v24 = vand.u32 4294901760, %v29_v1 }
  0x1a   :  { %v4713_v30 = vsub.f32 %v28_v29, %v149_v55  ;;  %v266_v37 = vand.u32 4294901760, %v265_v6  ;;  %v273_v47 = vand.u32 4294901760, %v272_v7  ;;  %v4715_v48 = vpack.c.bf16 %v203_v13, %v200_v8  ;;  %v47_v29 = vld [vmem:[%s6181_s1 + $0xe0] sm:$0xff]  ;;  %v48_v55 = vld [vmem:[%s6181_s1 + $0xe8] sm:$0xff] }
  0x1b   :  { %3913 = vmatprep.subr.bf16.mxu1 %v3912_v19  ;;  %v4717_v51 = vsub.f32 %v45_v56, %v200_v8  ;;  %v391_v52 = vsub.f32 %v4632_v63, %v6184_v11  ;;  %v398_v59 = vsub.f32 %v4653_v12, %v6183_v23  ;;  %v155_v2 = vand.u32 4294901760, %v30_v18  ;;  %v31_v8 = vld [vmem:[%s6181_s1 + $0x60] sm:$0xff] }
  0x1c   :  { %v3914_v3 = vpack.c.bf16 %v273_v47, %v266_v37  ;;  %3893 = vmatprep.subr.bf16.mxu0 %v4715_v48  ;;  %v4732_v56 = vsub.f32 %v46_v57, %v203_v13  ;;  %v6187_v6 = vand.u32 4294901760, %v4657_v17  ;;  %v6190_v7 = vand.u32 4294901760, %v4671_v42 }
  0x1d   :  { %v392_v19 = vand.u32 4294901760, %v391_v52  ;;  %v399_v23 = vand.u32 4294901760, %v398_v59  ;;  %v4739_v11 = vpack.c.bf16 %v155_v2, %v152_v24  ;;  %v4741_v0 = vsub.f32 %v29_v1, %v152_v24  ;;  %v32_v52 = vld [vmem:[%s6181_s1 + $0x68] sm:$0xff] }
  0x1e   :  { %3915 = vmatpush3.bf16.msra.mxu1 %v3914_v3  ;;  %v279_v57 = vsub.f32 %v4657_v17, %v6187_v6  ;;  %v286_v13 = vsub.f32 %v4671_v42, %v6190_v7  ;;  %v206_v37 = vand.u32 4294901760, %v47_v29  ;;  %v209_v47 = vand.u32 4294901760, %v48_v55 }
  0x1f   :  { %6315 = vst [vmem:[#allocation5_spill] sm:$0xff] %v4739_v11  ;;  %v3916_v59 = vpack.c.bf16 %v399_v23, %v392_v19  ;;  %3895 = vmatpush3.bf16.msra.mxu0 %v4739_v11  ;;  %v6193_v1 = vand.u32 4294901760, %v4675_v50  ;;  %v6192_v24 = vand.u32 4294901760, %v4690_v60  ;;  %v158_v3 = vand.u32 4294901760, %v31_v8 }
  0x20   :  { %v4755_v61 = vsub.f32 %v30_v18, %v155_v2  ;;  %v280_v6 = vand.u32 4294901760, %v279_v57  ;;  %v287_v34 = vand.u32 4294901760, %v286_v13  ;;  %v4757_v33 = vpack.c.bf16 %v209_v47, %v206_v37  ;;  %v49_v18 = vld [vmem:[%s6181_s1 + $0xf0] sm:$0xff]  ;;  %v50_v2 = vld [vmem:[%s6181_s1 + $0xf8] sm:$0xff] }
  0x21   :  { %3917 = vmatprep.subr.bf16.mxu1 %v3916_v59  ;;  %v4759_v7 = vsub.f32 %v47_v29, %v206_v37  ;;  %v405_v23 = vsub.f32 %v4675_v50, %v6193_v1  ;;  %v412_v19 = vsub.f32 %v4690_v60, %v6192_v24  ;;  %v161_v10 = vand.u32 4294901760, %v32_v52  ;;  %v33_v59 = vld [vmem:[%s6181_s1 + $0x70] sm:$0xff] }
  0x22   :  { %6316 = vst [vmem:[#allocation6_spill] sm:$0xff] %v4757_v33  ;;  %v3918_v57 = vpack.c.bf16 %v287_v34, %v280_v6  ;;  %3897 = vmatprep.subr.bf16.mxu0 %v4757_v33  ;;  %v4774_v29 = vsub.f32 %v48_v55, %v209_v47  ;;  %v6197_v13 = vand.u32 4294901760, %v4699_v5  ;;  %v6200_v37 = vand.u32 4294901760, %v4713_v30 }
  0x23   :  { %v406_v24 = vand.u32 4294901760, %v405_v23  ;;  %v413_v1 = vand.u32 4294901760, %v412_v19  ;;  %v4781_v9 = vpack.c.bf16 %v161_v10, %v158_v3  ;;  %v4783_v54 = vsub.f32 %v31_v8, %v158_v3  ;;  %v34_v23 = vld [vmem:[%s6181_s1 + $0x78] sm:$0xff] }
  0x24   :  { %3919 = vmatpush3.bf16.msra.mxu1 %v3918_v57  ;;  %v293_v34 = vsub.f32 %v4699_v5, %v6197_v13  ;;  %v300_v55 = vsub.f32 %v4713_v30, %v6200_v37  ;;  %v212_v6 = vand.u32 4294901760, %v49_v18  ;;  %v215_v47 = vand.u32 4294901760, %v50_v2 }
  0x25   :  { %6317 = vst [vmem:[#allocation7_spill] sm:$0xff] %v4781_v9  ;;  %v3920_v19 = vpack.c.bf16 %v413_v1, %v406_v24  ;;  %3899 = vmatpush3.bf16.msra.mxu0 %v4781_v9  ;;  %v6203_v8 = vand.u32 4294901760, %v4717_v51  ;;  %v6202_v3 = vand.u32 4294901760, %v4732_v56  ;;  %v164_v57 = vand.u32 4294901760, %v33_v59 }
  0x26   :  { %v4797_v53 = vsub.f32 %v32_v52, %v161_v10  ;;  %v294_v13 = vand.u32 4294901760, %v293_v34  ;;  %v301_v36 = vand.u32 4294901760, %v300_v55  ;;  %v4799_v35 = vpack.c.bf16 %v215_v47, %v212_v6  ;;  %v13_v10 = vld [vmem:[%s6180_s0 + $0x8] sm:$0xff] }
  0x27   :  { %3921 = vmatprep.subr.bf16.mxu1 %v3920_v19  ;;  %v4801_v37 = vsub.f32 %v49_v18, %v212_v6  ;;  %v419_v1 = vsub.f32 %v4717_v51, %v6203_v8  ;;  %v426_v24 = vsub.f32 %v4732_v56, %v6202_v3  ;;  %v167_v44 = vand.u32 4294901760, %v34_v23  ;;  %v12_v6 = vld [vmem:[%s6180_s0] sm:$0xff] }
  0x28   :  { %6318 = vst [vmem:[#allocation8_spill] sm:$0xff] %v4799_v35  ;;  %v3922_v52 = vpack.c.bf16 %v301_v36, %v294_v13  ;;  %3901 = vmatprep.subr.bf16.mxu0 %v4799_v35  ;;  %v4813_v34 = vsub.f32 %v50_v2, %v215_v47  ;;  %v6207_v18 = vand.u32 4294901760, %v4741_v0  ;;  %v6208_v55 = vand.u32 4294901760, %v4755_v61 }
  0x29   :  { %v420_v19 = vand.u32 4294901760, %v419_v1  ;;  %v427_v3 = vand.u32 4294901760, %v426_v24  ;;  %v4820_v8 = vpack.c.bf16 %v167_v44, %v164_v57  ;;  %v4822_v41 = vsub.f32 %v33_v59, %v164_v57 }
  0x2a   :  { %3923 = vmatpush3.bf16.msra.mxu1 %v3922_v52  ;;  %v307_v36 = vsub.f32 %v4741_v0, %v6207_v18  ;;  %v314_v2 = vsub.f32 %v4755_v61, %v6208_v55  ;;  %v4830_v13 = vand.u32 4294901760, %v13_v10  ;;  %v6211_v47 = vand.u32 4294901760, %v4759_v7 }
  0x2b   :  { %6319 = vst [vmem:[#allocation9_spill] sm:$0xff] %v4820_v8  ;;  %v3924_v35 = vpack.c.bf16 %v427_v3, %v420_v19  ;;  %3903 = vmatpush3.bf16.msra.mxu0 %v4820_v8  ;;  %v6217_v1 = vand.u32 4294901760, %v4774_v29  ;;  %v3936_v59 = vpack.c.bf16 %v4581_v32, %v4579_v31  ;;  %v4837_v57 = vand.u32 4294901760, %v12_v6 }
  0x2c   :  { %6320 = vst [vmem:[#allocation10_spill] sm:$0xff] %v4830_v13  ;;  %v308_v24 = vand.u32 4294901760, %v307_v36  ;;  %v315_v52 = vand.u32 4294901760, %v314_v2  ;;  %v4840_v18 = vsub.f32 %v13_v10, %v4830_v13  ;;  %v433_v55 = vsub.f32 %v4759_v7, %v6211_v47  ;;  %458 = vmatprep.mubr.f32.mxu1 %v4830_v13 }
  0x2d   :  { %3925 = vmatprep.subr.bf16.mxu1 %v3924_v35  ;;  %v440_v3 = vsub.f32 %v4774_v29, %v6217_v1  ;;  %3937 = vmatprep.subr.bf16.mxu0 %v3936_v59  ;;  %v4850_v19 = vsub.f32 %v12_v6, %v4837_v57  ;;  %v6216_v36 = vand.u32 4294901760, %v4783_v54  ;;  %v6218_v10 = vand.u32 4294901760, %v4797_v53 }
  0x2e   :  { %v4854_v2 = vsub.f32 %v34_v23, %v167_v44  ;;  %v3926_v8 = vpack.c.bf16 %v315_v52, %v308_v24  ;;  %v6219_v47 = vand.u32 4294901760, %v4840_v18  ;;  %v434_v9 = vand.u32 4294901760, %v433_v55 }
  0x2f   :  { %v441_v13 = vand.u32 4294901760, %v440_v3  ;;  %v225_v35 = vand.u32 4294901760, %v4850_v19  ;;  %v321_v59 = vsub.f32 %v4783_v54, %v6216_v36  ;;  %v328_v6 = vsub.f32 %v4797_v53, %v6218_v10 }
  0x30   :  { %3927 = vmatpush3.bf16.msra.mxu1 %v3926_v8  ;;  %v220_v44 = vsub.f32 %v4840_v18, %v6219_v47  ;;  %v3938_v23 = vpack.c.bf16 %v4559_v21, %v4549_v15  ;;  %v6224_v55 = vand.u32 4294901760, %v4801_v37  ;;  %v6227_v24 = vand.u32 4294901760, %v4813_v34 }
  0x31   :  { %v3928_v52 = vpack.c.bf16 %v441_v13, %v434_v9  ;;  %v226_v3 = vsub.f32 %v4850_v19, %v225_v35  ;;  %v322_v36 = vand.u32 4294901760, %v321_v59  ;;  %v329_v1 = vand.u32 4294901760, %v328_v6 }
  0x32   :  { %v221_v10 = vand.u32 4294901760, %v220_v44  ;;  %v447_v8 = vsub.f32 %v4801_v37, %v6224_v55  ;;  %v454_v47 = vsub.f32 %v4813_v34, %v6227_v24  ;;  %v6226_v33 = vand.u32 4294901760, %v4822_v41 }
  0x33   :  { %3929 = vmatprep.subr.bf16.mxu1 %v3928_v52  ;;  %v227_v11 = vand.u32 4294901760, %v226_v3  ;;  %v3930_v9 = vpack.c.bf16 %v329_v1, %v322_v36  ;;  %v3940_v13 = vpack.c.bf16 %v4572_v26, %v4570_v25  ;;  %v6225_v59 = vand.u32 4294901760, %v4854_v2 }
  0x34   :  { %222 = vmatprep.mubr.f32.mxu0 %v221_v10  ;;  %v448_v6 = vand.u32 4294901760, %v447_v8  ;;  %v455_v44 = vand.u32 4294901760, %v454_v47  ;;  %v335_v55 = vsub.f32 %v4822_v41, %v6226_v33  ;;  %v3942_v3 = vpack.c.bf16 %v4589_v38, %v4576_v28 }
  0x35   :  { %228 = vmatmul.mubr.f32.vlgmr.msra.gmra.mrb[0].mxu0 %v227_v11  ;;  %3931 = vmatpush3.bf16.msra.mxu1 %v3930_v9  ;;  %v342_v52 = vsub.f32 %v4854_v2, %v6225_v59  ;;  %v3944_v10 = vpack.c.bf16 %v4599_v43, %v4593_v40  ;;  %v3946_v11 = vpack.c.bf16 %v4628_v58, %v4604_v46  ;;  %v6322_v9 = vand.u32 4294901760, %v4581_v32 }
  0x36   :  { %3939 = vmatpush3.bf16.msra.mxu0 %v3938_v23  ;;  %v3932_v1 = vpack.c.bf16 %v455_v44, %v448_v6  ;;  %v336_v36 = vand.u32 4294901760, %v335_v55  ;;  %595 = vmatprep.mubr.f32.mxu0 %v4840_v18  ;;  %v3948_v8 = vpack.c.bf16 %v4653_v12, %v4632_v63  ;;  %v6321_v55 = vand.u32 4294901760, %v4579_v31 }
  0x37   :  { %3941 = vmatprep.subr.bf16.mxu0 %v3940_v13  ;;  %v343_v47 = vand.u32 4294901760, %v342_v52  ;;  %v6323_v44 = vand.u32 4294901760, %v4549_v15  ;;  %v6324_v13 = vand.u32 4294901760, %v4559_v21  ;;  %v6325_v59 = vand.u32 4294901760, %v4570_v25 }
  0x38   :  { %3933 = vmatprep.subr.bf16.mxu1 %v3932_v1  ;;  %v4000_v6 = vpack.c.bf16 %v6322_v9, %v6321_v55  ;;  %v6326_v1 = vand.u32 4294901760, %v4572_v26  ;;  %v6327_v24 = vand.u32 4294901760, %v4576_v28  ;;  %v6329_v31 = vand.u32 4294901760, %v4593_v40 }
  0x39   :  { %v3934_v23 = vpack.c.bf16 %v343_v47, %v336_v36  ;;  %v4002_v52 = vpack.c.bf16 %v6324_v13, %v6323_v44  ;;  %v6328_v36 = vand.u32 4294901760, %v4589_v38  ;;  %v6330_v32 = vand.u32 4294901760, %v4599_v43  ;;  %v6344_v13 = vld [vmem:[#allocation10_spill] sm:$0xff] }
  0x3a   :  { %v4004_v33 = vpack.c.bf16 %v6326_v1, %v6325_v59  ;;  %3943 = vmatpush3.bf16.msra.mxu0 %v3942_v3  ;;  %v6331_v15 = vand.u32 4294901760, %v4604_v46  ;;  %v6332_v21 = vand.u32 4294901760, %v4628_v58  ;;  %v6333_v25 = vand.u32 4294901760, %v4632_v63  ;;  %v68_v1 = vld [vmem:[%s6181_s1 + $0x188] sm:$0xff] }
  0x3b   :  { %v4006_v47 = vpack.c.bf16 %v6328_v36, %v6327_v24  ;;  %v4008_v55 = vpack.c.bf16 %v6330_v32, %v6329_v31  ;;  %v6334_v26 = vand.u32 4294901760, %v4653_v12  ;;  %3935 = vmatpush3.bf16.msra.mxu1 %v3934_v23  ;;  %3945 = vmatprep.subr.bf16.mxu0 %v3944_v10  ;;  %v6335_v28 = vand.u32 4294901760, %v4657_v17  ;;  %v51_v36 = vld [vmem:[%s6181_s1 + $0x100] sm:$0xff]  ;;  %v6345_v31 = vld [vmem:[#allocation7_spill] sm:$0xff] }
  0x3c   :  { %v4923_v9 = vpack.c.bf16 %v6332_v21, %v6331_v15  ;;  %v6336_v38 = vand.u32 4294901760, %v4671_v42  ;;  %v6337_v43 = vand.u32 4294901760, %v4675_v50  ;;  %v6338_v46 = vand.u32 4294901760, %v4690_v60  ;;  %3969 = vmatprep.subr.bf16.mxu1 %v4547_v14  ;;  %v6346_v32 = vld [vmem:[#allocation8_spill] sm:$0xff] }
  0x3d   :  { %v4929_v59 = vpack.c.bf16 %v6334_v26, %v6333_v25  ;;  %v6339_v63 = vand.u32 4294901760, %v4699_v5  ;;  %v6340_v12 = vand.u32 4294901760, %v4713_v30  ;;  %v3950_v3 = vpack.c.bf16 %v4671_v42, %v4657_v17  ;;  %v6347_v26 = vld [vmem:[#allocation9_spill] sm:$0xff] }
  0x3e   :  { %v4935_v40 = vpack.c.bf16 %v6336_v38, %v6335_v28  ;;  %v4941_v58 = vpack.c.bf16 %v6338_v46, %v6337_v43  ;;  %460 = vmatmul.mubr.f32.vlgmr.msra.gmra.mrb[0].mxu1 %v4837_v57  ;;  %3947 = vmatpush3.bf16.msra.mxu0 %v3946_v11  ;;  %v3952_v10 = vpack.c.bf16 %v4690_v60, %v4675_v50  ;;  %v6341_v23 = vand.u32 4294901760, %v4840_v18  ;;  %v6342_v18 = vld [vmem:[#allocation5_spill] sm:$0xff]  ;;  %v6343_v11 = vld [vmem:[#allocation6_spill] sm:$0xff]  ;;  %v70_v38 = vld [vmem:[%s6181_s1 + $0x198] sm:$0xff] }
  0x3f   :  { %v4947_v24 = vpack.c.bf16 %v6340_v12, %v6339_v63  ;;  %3971 = vmatpush3.bf16.msra.mxu1 %v4557_v20  ;;  %3949 = vmatprep.subr.bf16.mxu0 %v3948_v8  ;;  %v3954_v44 = vpack.c.bf16 %v4713_v30, %v4699_v5  ;;  %v3956_v17 = vpack.c.bf16 %v4732_v56, %v4717_v51  ;;  %v67_v8 = vld [vmem:[%s6181_s1 + $0x180] sm:$0xff]  ;;  %v1035_v15 = vand.u32 4294901760, %v68_v1  ;;  %v69_v28 = vld [vmem:[%s6181_s1 + $0x190] sm:$0xff] }
  0x40   :  { %3973 = vmatprep.subr.bf16.mxu1 %v4561_v22  ;;  %702 = vmatprep.mubr.f32.mxu1 %v6341_v23  ;;  %v3958_v42 = vpack.c.bf16 %v4755_v61, %v4741_v0  ;;  %v3960_v50 = vpack.c.bf16 %v4774_v29, %v4759_v7  ;;  %v3962_v60 = vpack.c.bf16 %v4797_v53, %v4783_v54  ;;  %v984_v21 = vand.u32 4294901760, %v51_v36  ;;  %v53_v43 = vld [vmem:[%s6181_s1 + $0x110] sm:$0xff] }
  0x41   :  { %v3964_v5 = vpack.c.bf16 %v4813_v34, %v4801_v37  ;;  %v3966_v30 = vpack.c.bf16 %v4854_v2, %v4822_v41  ;;  %v6349_v12 = vand.u32 4294901760, %v4732_v56  ;;  %v1041_v23 = vand.u32 4294901760, %v70_v38 }
  0x42   :  { %3951 = vmatpush3.bf16.msra.mxu0 %v3950_v3  ;;  %v5017_v46 = vsub.f32 %v51_v36, %v984_v21  ;;  %vm117_vm0 = vcmask 130048   ;;  %vm4505_vm1 = vmmov 0   ;;  %vm3166_vm2 = vcmask 80896  }
  0x43   :  { %3975 = vmatpush3.bf16.msra.mxu1 %v4574_v27  ;;  %3953 = vmatprep.subr.bf16.mxu0 %v3952_v10  ;;  %v1038_v10 = vand.u32 4294901760, %v69_v28 }
  0x44   :  { %3977 = vmatprep.subr.bf16.mxu1 %v4591_v39 }
  0x45   :  { %v5084_v36 = vpack.c.bf16 %v1041_v23, %v1038_v10 }
  0x46   :  { %3955 = vmatpush3.bf16.msra.mxu0 %v3954_v44  ;;  %v6350_v44 = vand.u32 4294901760, %v4741_v0  ;;  %v6355_v0 = vand.u32 4294901760, %v4797_v53  ;;  %v15_v53 = vld [vmem:[%s6180_s0 + $0x18] sm:$0xff] }
  0x47   :  { %3979 = vmatpush3.bf16.msra.mxu1 %v4602_v45  ;;  %3957 = vmatprep.subr.bf16.mxu0 %v3956_v17  ;;  %v6351_v17 = vand.u32 4294901760, %v4755_v61  ;;  %v6354_v61 = vand.u32 4294901760, %v4783_v54  ;;  %6360 = vst [vmem:[#allocation5_spill] sm:$0xff] %v5084_v36 }
  0x48   :  { %3981 = vmatprep.subr.bf16.mxu1 %v4630_v62 }
  0x4a   :  { %3959 = vmatpush3.bf16.msra.mxu0 %v3958_v42  ;;  %v4022_v42 = vpack.c.bf16 %v6351_v17, %v6350_v44  ;;  %v5094_v44 = vand.u32 4294901760, %v15_v53 }
  0x4b   :  { %3983 = vmatpush3.bf16.msra.mxu1 %v4655_v16  ;;  %3961 = vmatprep.subr.bf16.mxu0 %v3960_v50  ;;  %v71_v50 = vld [vmem:[%s6181_s1 + $0x1a0] sm:$0xff] }
  0x4c   :  { %3985 = vmatprep.subr.bf16.mxu1 %v4673_v49  ;;  %6362 = vst [vmem:[#allocation10_spill] sm:$0xff] %v5094_v44 }
  0x4e   :  { %3963 = vmatpush3.bf16.msra.mxu0 %v3962_v60 }
  0x4f   :  { %3987 = vmatpush3.bf16.msra.mxu1 %v4697_v4  ;;  %3965 = vmatprep.subr.bf16.mxu0 %v3964_v5  ;;  %v6358_v5 = vand.u32 4294901760, %v4822_v41  ;;  %v55_v41 = vld [vmem:[%s6181_s1 + $0x120] sm:$0xff] }
  0x50   :  { %3989 = vmatprep.subr.bf16.mxu1 %v4715_v48 }
  0x52   :  { %3967 = vmatpush3.bf16.msra.mxu0 %v3966_v30  ;;  %v6359_v30 = vand.u32 4294901760, %v4854_v2  ;;  %v6236_v2 = vand.u32 4294901760, %v5017_v46 }
  0x53   :  { %3991 = vmatpush3.bf16.msra.mxu1 %v6342_v18  ;;  %4001 = vmatprep.subr.bf16.mxu0 %v4000_v6  ;;  %v52_v6 = vld [vmem:[%s6181_s1 + $0x108] sm:$0xff] }
  0x54   :  { %3993 = vmatprep.subr.bf16.mxu1 %v6343_v11  ;;  %v987_v25 = vand.u32 4294901760, %v52_v6 }
  0x55   :  { %598 = vmatmul.mubr.f32.vlgmr.msra.gmra.mrb[2].mxu0 %v4850_v19  ;;  %v6352_v19 = vand.u32 4294901760, %v4759_v7  ;;  %v5051_v7 = vpack.c.bf16 %v6355_v0, %v6354_v61 }
  0x56   :  { %4003 = vmatpush3.bf16.msra.mxu0 %v4002_v52  ;;  %872 = vmatprep.mubr.f32.mxu0 %v6344_v13  ;;  %v1032_v52 = vand.u32 4294901760, %v67_v8  ;;  %v5019_v63 = vsub.f32 %v52_v6, %v987_v25  ;;  %v1044_v6 = vand.u32 4294901760, %v71_v50 }
  0x57   :  { %3995 = vmatpush3.bf16.msra.mxu1 %v6345_v31  ;;  %4005 = vmatprep.subr.bf16.mxu0 %v4004_v33 }
  0x58   :  { %3997 = vmatprep.subr.bf16.mxu1 %v6346_v32  ;;  %v5007_v33 = vsub.f32 %v67_v8, %v1032_v52  ;;  %v5063_v8 = vpack.c.bf16 %v6359_v30, %v6358_v5  ;;  %v5070_v54 = vpack.c.bf16 %v1035_v15, %v1032_v52  ;;  %v5122_v17 = vsub.f32 %v71_v50, %v1044_v6  ;;  %v58_v50 = vld [vmem:[%s6181_s1 + $0x138] sm:$0xff] }
  0x5a   :  { %4007 = vmatpush3.bf16.msra.mxu0 %v4006_v47  ;;  %v54_v47 = vld [vmem:[%s6181_s1 + $0x118] sm:$0xff] }
  0x5b   :  { %3999 = vmatpush3.bf16.msra.mxu1 %v6347_v26  ;;  %4009 = vmatprep.subr.bf16.mxu0 %v4008_v55  ;;  %v5015_v55 = vsub.f32 %v68_v1, %v1035_v15  ;;  %v993_v56 = vand.u32 4294901760, %v54_v47  ;;  %v5082_v1 = vpack.c.bf16 %v987_v25, %v984_v21  ;;  %v5088_v15 = vsub.f32 %v69_v28, %v1038_v10  ;;  %v74_v28 = vld [vmem:[%s6181_s1 + $0x1b8] sm:$0xff] }
  0x5c   :  { %4033 = vmatprep.subr.bf16.mxu1 %v4547_v14  ;;  %v6348_v14 = vand.u32 4294901760, %v4717_v51  ;;  %v990_v51 = vand.u32 4294901760, %v53_v43  ;;  %v996_v25 = vand.u32 4294901760, %v55_v41 }
  0x5e   :  { %706 = vmatmul.mubr.f32.vlgmr.msra.gmra.mrb[2].mxu1 %v225_v35  ;;  %4011 = vmatpush3.bf16.msra.mxu0 %v4923_v9  ;;  %v4020_v3 = vpack.c.bf16 %v6349_v12, %v6348_v14  ;;  %v6353_v35 = vand.u32 4294901760, %v4774_v29  ;;  %v6356_v29 = vand.u32 4294901760, %v4801_v37  ;;  %v6237_v37 = vand.u32 4294901760, %v5015_v55 }
  0x5f   :  { %4035 = vmatpush3.bf16.msra.mxu1 %v4557_v20  ;;  %4013 = vmatprep.subr.bf16.mxu0 %v4929_v59  ;;  %v72_v20 = vld [vmem:[%s6181_s1 + $0x1a8] sm:$0xff]  ;;  %v6357_v59 = vand.u32 4294901760, %v4813_v34  ;;  %v5090_v14 = vsub.f32 %v70_v38, %v1041_v23  ;;  %v5092_v12 = vpack.c.bf16 %v993_v56, %v990_v51  ;;  %v5108_v38 = vsub.f32 %v54_v47, %v993_v56 }
  0x60   :  { %v5038_v9 = vpack.c.bf16 %v6353_v35, %v6352_v19  ;;  %4037 = vmatprep.subr.bf16.mxu1 %v4561_v22  ;;  %976 = vmatprep.mubr.f32.mxu1 %v6344_v13  ;;  %v6240_v22 = vand.u32 4294901760, %v5007_v33  ;;  %v56_v34 = vld [vmem:[%s6181_s1 + $0x128] sm:$0xff]  ;;  %v6235_v13 = vand.u32 4294901760, %v5019_v63  ;;  %v1047_v52 = vand.u32 4294901760, %v72_v20 }
  0x61   :  { %v5057_v60 = vpack.c.bf16 %v6357_v59, %v6356_v29  ;;  %6361 = vst [vmem:[#allocation6_spill] sm:$0xff] %v5092_v12  ;;  %v5127_v19 = vsub.f32 %v15_v53, %v5094_v44  ;;  %v6231_v56 = vand.u32 4294901760, %v5088_v15  ;;  %v6230_v61 = vand.u32 4294901760, %v5090_v14 }
  0x62   :  { %4015 = vmatpush3.bf16.msra.mxu0 %v4935_v40  ;;  %v5097_v40 = vsub.f32 %v53_v43, %v990_v51  ;;  %v1211_v21 = vsub.f32 %v5007_v33, %v6240_v22  ;;  %v1099_v43 = vsub.f32 %v5017_v46, %v6236_v2  ;;  %v1106_v10 = vsub.f32 %v5019_v63, %v6235_v13 }
  0x63   :  { %4039 = vmatpush3.bf16.msra.mxu1 %v4574_v27  ;;  %4017 = vmatprep.subr.bf16.mxu0 %v4941_v58  ;;  %v999_v27 = vand.u32 4294901760, %v56_v34  ;;  %v73_v58 = vld [vmem:[%s6181_s1 + $0x1b0] sm:$0xff]  ;;  %v5120_v23 = vpack.c.bf16 %v1047_v52, %v1044_v6  ;;  %v5124_v47 = vsub.f32 %v72_v20, %v1047_v52  ;;  %v1053_v51 = vand.u32 4294901760, %v74_v28 }
  0x64   :  { %4041 = vmatprep.subr.bf16.mxu1 %v4591_v39  ;;  %v1218_v39 = vsub.f32 %v5015_v55, %v6237_v37  ;;  %v1050_v35 = vand.u32 4294901760, %v73_v58  ;;  %v1212_v20 = vand.u32 4294901760, %v1211_v21  ;;  %v1100_v59 = vand.u32 4294901760, %v1099_v43 }
  0x65   :  { %6363 = vst [vmem:[#allocation7_spill] sm:$0xff] %v5120_v23  ;;  %v5139_v0 = vpack.c.bf16 %v999_v27, %v996_v25  ;;  %v1107_v5 = vand.u32 4294901760, %v1106_v10  ;;  %v6228_v30 = vand.u32 4294901760, %v5097_v40  ;;  %v1005_v6 = vand.u32 4294901760, %v58_v50 }
  0x66   :  { %4019 = vmatpush3.bf16.msra.mxu0 %v4947_v24  ;;  %v57_v24 = vld [vmem:[%s6181_s1 + $0x130] sm:$0xff]  ;;  %v1219_v29 = vand.u32 4294901760, %v1218_v39  ;;  %v6229_v52 = vand.u32 4294901760, %v5108_v38  ;;  %v6241_v21 = vand.u32 4294901760, %v5127_v19  ;;  %v6232_v39 = vand.u32 4294901760, %v5124_v47 }
  0x67   :  { %4043 = vmatpush3.bf16.msra.mxu1 %v4602_v45  ;;  %4021 = vmatprep.subr.bf16.mxu0 %v4020_v3  ;;  %6364 = vst [vmem:[#allocation8_spill] sm:$0xff] %v5139_v0  ;;  %v5141_v45 = vsub.f32 %v55_v41, %v996_v25  ;;  %v5143_v3 = vsub.f32 %v56_v34, %v999_v27  ;;  %v1002_v53 = vand.u32 4294901760, %v57_v24 }
  0x68   :  { %4045 = vmatprep.subr.bf16.mxu1 %v4630_v62  ;;  %v75_v62 = vld [vmem:[%s6181_s1 + $0x1c0] sm:$0xff]  ;;  %v5153_v41 = vpack.c.bf16 %v1053_v51, %v1050_v35  ;;  %v1232_v34 = vsub.f32 %v5090_v14, %v6230_v61  ;;  %v5162_v25 = vsub.f32 %v73_v58, %v1050_v35  ;;  %v5164_v27 = vsub.f32 %v74_v28, %v1053_v51 }
  0x69   :  { %v5171_v43 = vpack.c.bf16 %v1219_v29, %v1212_v20  ;;  %v5173_v10 = vpack.c.bf16 %v1107_v5, %v1100_v59  ;;  %v1056_v58 = vand.u32 4294901760, %v75_v62  ;;  %v5179_v28 = vpack.c.bf16 %v1005_v6, %v1002_v53 }
  0x6a   :  { %4023 = vmatpush3.bf16.msra.mxu0 %v4022_v42  ;;  %6365 = vst [vmem:[#allocation9_spill] sm:$0xff] %v5153_v41  ;;  %v1225_v42 = vsub.f32 %v5088_v15, %v6231_v56  ;;  %v1120_v35 = vsub.f32 %v5108_v38, %v6229_v52  ;;  %v6233_v51 = vand.u32 4294901760, %v5141_v45  ;;  %v1082_v20 = vsub.f32 %v5127_v19, %v6241_v21  ;;  %v60_v56 = vld [vmem:[%s6181_s1 + $0x148] sm:$0xff] }
  0x6b   :  { %4047 = vmatpush3.bf16.msra.mxu1 %v4655_v16  ;;  %4025 = vmatprep.subr.bf16.mxu0 %v5038_v9  ;;  %v76_v16 = vld [vmem:[%s6181_s1 + $0x1c8] sm:$0xff]  ;;  %v6234_v9 = vand.u32 4294901760, %v5122_v17  ;;  %6366 = vst [vmem:[#allocation11_spill] sm:$0xff] %v5179_v28  ;;  %v1233_v59 = vand.u32 4294901760, %v1232_v34  ;;  %v5195_v52 = vsub.f32 %v57_v24, %v1002_v53  ;;  %v5197_v61 = vsub.f32 %v58_v50, %v1005_v6 }
  0x6c   :  { %4049 = vmatprep.subr.bf16.mxu1 %v4673_v49  ;;  %v1113_v49 = vsub.f32 %v5097_v40, %v6228_v30  ;;  %v1226_v29 = vand.u32 4294901760, %v1225_v42  ;;  %v1059_v5 = vand.u32 4294901760, %v76_v16  ;;  %v6238_v30 = vand.u32 4294901760, %v5143_v3 }
  0x6d   :  { %v5205_v34 = vsub.f32 %v75_v62, %v1056_v58  ;;  %v6242_v24 = vand.u32 4294901760, %v5164_v27  ;;  %v1121_v50 = vand.u32 4294901760, %v1120_v35  ;;  %v1127_v6 = vsub.f32 %v5141_v45, %v6233_v51  ;;  %v77_v62 = vld [vmem:[%s6181_s1 + $0x1d0] sm:$0xff] }
  0x6e   :  { %4027 = vmatpush3.bf16.msra.mxu0 %v5051_v7  ;;  %v59_v7 = vld [vmem:[%s6181_s1 + $0x140] sm:$0xff]  ;;  %v1114_v42 = vand.u32 4294901760, %v1113_v49  ;;  %v78_v49 = vld [vmem:[%s6181_s1 + $0x1d8] sm:$0xff]  ;;  %v5226_v35 = vpack.c.bf16 %v1059_v5, %v1056_v58  ;;  %v1134_v51 = vsub.f32 %v5143_v3, %v6238_v30  ;;  %v1011_v37 = vand.u32 4294901760, %v60_v56 }
  0x6f   :  { %4051 = vmatpush3.bf16.msra.mxu1 %v4697_v4  ;;  %4029 = vmatprep.subr.bf16.mxu0 %v5057_v60  ;;  %v1239_v4 = vsub.f32 %v5122_v17, %v6234_v9  ;;  %v1246_v60 = vsub.f32 %v5124_v47, %v6232_v39  ;;  %v1008_v53 = vand.u32 4294901760, %v59_v7  ;;  %v1083_v39 = vand.u32 4294901760, %v1082_v20  ;;  %v62_v58 = vld [vmem:[%s6181_s1 + $0x158] sm:$0xff] }
  0x70   :  { %4053 = vmatprep.subr.bf16.mxu1 %v4715_v48  ;;  %v6239_v48 = vand.u32 4294901760, %v5162_v25  ;;  %6367 = vst [vmem:[#allocation12_spill] sm:$0xff] %v5226_v35  ;;  %v5232_v9 = vsub.f32 %v76_v16, %v1059_v5  ;;  %v1062_v20 = vand.u32 4294901760, %v77_v62  ;;  %v1260_v16 = vsub.f32 %v5164_v27, %v6242_v24 }
  0x71   :  { %v1240_v13 = vand.u32 4294901760, %v1239_v4  ;;  %v1247_v2 = vand.u32 4294901760, %v1246_v60  ;;  %v5250_v5 = vsub.f32 %v59_v7, %v1008_v53  ;;  %v1128_v4 = vand.u32 4294901760, %v1127_v6 }
  0x72   :  { %4031 = vmatpush3.bf16.msra.mxu0 %v5063_v8  ;;  %v5224_v8 = vpack.c.bf16 %v1233_v59, %v1226_v29  ;;  %v1065_v29 = vand.u32 4294901760, %v78_v49  ;;  %v5248_v59 = vpack.c.bf16 %v1121_v50, %v1114_v42  ;;  %v1135_v30 = vand.u32 4294901760, %v1134_v51  ;;  %v79_v42 = vld [vmem:[%s6181_s1 + $0x1e0] sm:$0xff] }
  0x73   :  { %4055 = vmatpush3.bf16.msra.mxu1 %v6342_v18  ;;  %4065 = vmatprep.subr.bf16.mxu0 %v5070_v54  ;;  %v61_v18 = vld [vmem:[%s6181_s1 + $0x150] sm:$0xff]  ;;  %v1017_v22 = vand.u32 4294901760, %v62_v58  ;;  %v5260_v7 = vpack.c.bf16 %v1247_v2, %v1240_v13  ;;  %v5262_v50 = vpack.c.bf16 %v1011_v37, %v1008_v53  ;;  %v6243_v51 = vand.u32 4294901760, %v5205_v34 }
  0x74   :  { %4057 = vmatprep.subr.bf16.mxu1 %v6343_v11  ;;  %v1253_v11 = vsub.f32 %v5162_v25, %v6239_v48  ;;  %v1014_v48 = vand.u32 4294901760, %v61_v18  ;;  %v5270_v6 = vpack.c.bf16 %v1065_v29, %v1062_v20  ;;  %v1261_v21 = vand.u32 4294901760, %v1260_v16 }
  0x75   :  { %874 = vmatmul.mubr.f32.vlgmr.msra.gmra.mrb[4].mxu0 %v4837_v57  ;;  %v5281_v2 = vsub.f32 %v78_v49, %v1065_v29  ;;  %v6372_v13 = vand.u32 4294901760, %v5195_v52  ;;  %v1068_v53 = vand.u32 4294901760, %v79_v42  ;;  %v6373_v60 = vand.u32 4294901760, %v5197_v61 }
  0x76   :  { %4067 = vmatpush3.bf16.msra.mxu0 %v5082_v1  ;;  %1084 = vmatprep.mubr.f32.mxu0 %v1083_v39  ;;  %v5264_v39 = vsub.f32 %v60_v56, %v1011_v37  ;;  %6369 = vst [vmem:[#allocation14_spill] sm:$0xff] %v5270_v6  ;;  %v1254_v24 = vand.u32 4294901760, %v1253_v11  ;;  %v5279_v37 = vsub.f32 %v77_v62, %v1062_v20 }
  0x77   :  { %4059 = vmatpush3.bf16.msra.mxu1 %v6345_v31  ;;  %4069 = vmatprep.subr.bf16.mxu0 %v5084_v36  ;;  %v80_v31 = vld [vmem:[%s6181_s1 + $0x1e8] sm:$0xff]  ;;  %6371 = vst [vmem:[#allocation16_spill] sm:$0xff] %v5281_v2  ;;  %v1141_v56 = vsub.f32 %v5195_v52, %v6372_v13  ;;  %v5288_v11 = vpack.c.bf16 %v1135_v30, %v1128_v4  ;;  %v6379_v36 = vand.u32 4294901760, %v5281_v2 }
  0x78   :  { %4061 = vmatprep.subr.bf16.mxu1 %v6346_v32  ;;  %6368 = vst [vmem:[#allocation13_spill] sm:$0xff] %v5264_v39  ;;  %v5276_v32 = vld [vmem:[%s6181_s1 + $0x160] sm:$0xff]  ;;  %6370 = vst [vmem:[#allocation15_spill] sm:$0xff] %v5279_v37  ;;  %v5290_v16 = vpack.c.bf16 %v1017_v22, %v1014_v48  ;;  %v1148_v62 = vsub.f32 %v5197_v61, %v6373_v60  ;;  %v1071_v20 = vand.u32 4294901760, %v80_v31  ;;  %v5306_v30 = vld [vmem:[%s6181_s1 + $0x168] sm:$0xff]  ;;  %v6374_v60 = vand.u32 4294901760, %v5232_v9 }
  0x79   :  { %v5296_v49 = vsub.f32 %v61_v18, %v1014_v48  ;;  %v5298_v29 = vsub.f32 %v62_v58, %v1017_v22  ;;  %v4108_v13 = vpack.c.bf16 %v1261_v21, %v1254_v24  ;;  %v5317_v18 = vld [vmem:[%s6181_s1 + $0x1f0] sm:$0xff]  ;;  %v5322_v58 = vld [vmem:[%s6181_s1 + $0x1f8] sm:$0xff]  ;;  %v1142_v21 = vand.u32 4294901760, %v1141_v56 }
  0x7a   :  { %4071 = vmatpush3.bf16.msra.mxu0 %v5092_v12  ;;  %v5326_v24 = vsub.f32 %v79_v42, %v1068_v53  ;;  %v14_v22 = vld [vmem:[%s6180_s0 + $0x10] sm:$0xff]  ;;  %v1149_v48 = vand.u32 4294901760, %v1148_v62  ;;  %v5335_v4 = vpack.c.bf16 %v1071_v20, %v1068_v53  ;;  %v1023_v42 = vand.u32 4294901760, %v5306_v30 }
  0x7b   :  { %4063 = vmatpush3.bf16.msra.mxu1 %v6347_v26  ;;  %4073 = vmatprep.subr.bf16.mxu0 %v5120_v23  ;;  %v1267_v26 = vsub.f32 %v5205_v34, %v6243_v51  ;;  %v6375_v51 = vand.u32 4294901760, %v5276_v32  ;;  %v5351_v53 = vld [vmem:[%s6181_s1 + $0x170] sm:$0xff]  ;;  %v6378_v23 = vand.u32 4294901760, %v5279_v37 }
  0x7c   :  { %4097 = vmatprep.subr.bf16.mxu1 %v5171_v43  ;;  %v1274_v43 = vsub.f32 %v5232_v9, %v6374_v60 }
  0x7d   :  { %v1268_v56 = vand.u32 4294901760, %v1267_v26  ;;  %v5344_v60 = vsub.f32 %v5276_v32, %v6375_v51  ;;  %v6376_v51 = vand.u32 4294901760, %v5250_v5  ;;  %v1281_v12 = vsub.f32 %v5279_v37, %v6378_v23 }
  0x7e   :  { %978 = vmatmul.mubr.f32.vlgmr.msra.gmra.mrb[4].mxu1 %v4837_v57  ;;  %4075 = vmatpush3.bf16.msra.mxu0 %v5139_v0  ;;  %v5337_v57 = vsub.f32 %v80_v31, %v1071_v20  ;;  %v1074_v0 = vand.u32 4294901760, %v5317_v18  ;;  %v5356_v31 = vld [vmem:[%s6181_s1 + $0x178] sm:$0xff]  ;;  %v6377_v20 = vand.u32 4294901760, %v5264_v39 }
  0x7f   :  { %4099 = vmatpush3.bf16.msra.mxu1 %v5173_v10  ;;  %4077 = vmatprep.subr.bf16.mxu0 %v5153_v41  ;;  %v1077_v10 = vand.u32 4294901760, %v5322_v58  ;;  %v1155_v62 = vsub.f32 %v5250_v5, %v6376_v51  ;;  %v5365_v41 = vand.u32 4294901760, %v14_v22  ;;  %v1029_v23 = vand.u32 4294901760, %v5356_v31 }
  0x80   :  { %4101 = vmatprep.subr.bf16.mxu1 %v5224_v8  ;;  %1320 = vmatprep.mubr.f32.mxu1 %v5094_v44  ;;  %v1275_v8 = vand.u32 4294901760, %v1274_v43  ;;  %v1162_v26 = vsub.f32 %v5264_v39, %v6377_v20  ;;  %v1288_v43 = vsub.f32 %v5281_v2, %v6379_v36  ;;  %v4110_v20 = vpack.c.bf16 %v1149_v48, %v1142_v21 }
  0x81   :  { %v5379_v39 = vsub.f32 %v5306_v30, %v1023_v42  ;;  %v5385_v36 = vsub.f32 %v5317_v18, %v1074_v0  ;;  %v5388_v44 = vsub.f32 %v5322_v58, %v1077_v10  ;;  %v6268_v51 = vand.u32 4294901760, %v5337_v57 }
  0x82   :  { %4079 = vmatpush3.bf16.msra.mxu0 %v5179_v28  ;;  %v1026_v28 = vand.u32 4294901760, %v5351_v53  ;;  %v4112_v48 = vpack.c.bf16 %v1275_v8, %v1268_v56  ;;  %v1156_v21 = vand.u32 4294901760, %v1155_v62  ;;  %v1163_v30 = vand.u32 4294901760, %v1162_v26 }
  0x83   :  { %4103 = vmatpush3.bf16.msra.mxu1 %v5248_v59  ;;  %4081 = vmatprep.subr.bf16.mxu0 %v5226_v35  ;;  %v5393_v35 = vsub.f32 %v14_v22, %v5365_v41  ;;  %v1282_v2 = vand.u32 4294901760, %v1281_v12  ;;  %v6380_v18 = vand.u32 4294901760, %v5296_v49  ;;  %v6381_v58 = vand.u32 4294901760, %v5298_v29 }
  0x84   :  { %4105 = vmatprep.subr.bf16.mxu1 %v5260_v7  ;;  %v1289_v7 = vand.u32 4294901760, %v1288_v43  ;;  %v5405_v56 = vsub.f32 %v5351_v53, %v1026_v28  ;;  %v5408_v22 = vsub.f32 %v5356_v31, %v1029_v23  ;;  %v6382_v62 = vand.u32 4294901760, %v5326_v24 }
  0x85   :  { %v1169_v37 = vsub.f32 %v5296_v49, %v6380_v18  ;;  %v1176_v59 = vsub.f32 %v5298_v29, %v6381_v58  ;;  %v1308_v43 = vand.u32 4294901760, %v5385_v36  ;;  %v6383_v31 = vand.u32 4294901760, %v5276_v32 }
  0x86   :  { %4083 = vmatpush3.bf16.msra.mxu0 %v5262_v50  ;;  %v1295_v26 = vsub.f32 %v5326_v24, %v6382_v62  ;;  %v5424_v58 = vpack.c.bf16 %v1077_v10, %v1074_v0  ;;  %v4114_v8 = vpack.c.bf16 %v1163_v30, %v1156_v21  ;;  %v4116_v62 = vpack.c.bf16 %v1289_v7, %v1282_v2 }
  0x87   :  { %4107 = vmatpush3.bf16.msra.mxu1 %v5288_v11  ;;  %4085 = vmatprep.subr.bf16.mxu0 %v5270_v6  ;;  %v1302_v11 = vsub.f32 %v5337_v57, %v6268_v51  ;;  %v5422_v18 = vpack.c.bf16 %v1023_v42, %v6383_v31  ;;  %v1170_v12 = vand.u32 4294901760, %v1169_v37  ;;  %v1177_v6 = vand.u32 4294901760, %v1176_v59 }
  0x88   :  { %4109 = vmatprep.subr.bf16.mxu1 %v4108_v13  ;;  %v1087_v13 = vand.u32 4294901760, %v5393_v35  ;;  %v6384_v51 = vand.u32 4294901760, %v5344_v60  ;;  %v6385_v32 = vand.u32 4294901760, %v5379_v39  ;;  %v6269_v42 = vand.u32 4294901760, %v5405_v56 }
  0x89   :  { %v6270_v10 = vand.u32 4294901760, %v5408_v22  ;;  %v1296_v21 = vand.u32 4294901760, %v1295_v26  ;;  %v1303_v2 = vand.u32 4294901760, %v1302_v11  ;;  %v1309_v37 = vsub.f32 %v5385_v36, %v1308_v43 }
  0x8a   :  { %4087 = vmatpush3.bf16.msra.mxu0 %v5290_v16  ;;  %v1183_v53 = vsub.f32 %v5344_v60, %v6384_v51  ;;  %v1190_v0 = vsub.f32 %v5379_v39, %v6385_v32  ;;  %v1088_v51 = vsub.f32 %v5393_v35, %v1087_v13  ;;  %v5447_v30 = vpack.c.bf16 %v1029_v23, %v1026_v28 }
  0x8b   :  { %4111 = vmatpush3.bf16.msra.mxu1 %v4110_v20  ;;  %4089 = vmatprep.subr.bf16.mxu0 %v5335_v4  ;;  %v6386_v20 = vand.u32 4294901760, %v5388_v44  ;;  %v4118_v7 = vpack.c.bf16 %v1177_v6, %v1170_v12  ;;  %v1197_v31 = vsub.f32 %v5405_v56, %v6269_v42  ;;  %v1204_v32 = vsub.f32 %v5408_v22, %v6270_v10 }
  0x8c   :  { %4113 = vmatprep.subr.bf16.mxu1 %v4112_v48  ;;  %v4128_v48 = vpack.c.bf16 %v5015_v55, %v5007_v33  ;;  %v1184_v26 = vand.u32 4294901760, %v1183_v53  ;;  %v1191_v11 = vand.u32 4294901760, %v1190_v0  ;;  %v4120_v28 = vpack.c.bf16 %v1303_v2, %v1296_v21 }
  0x8d   :  { %v1316_v59 = vsub.f32 %v5388_v44, %v6386_v20  ;;  %v1310_v23 = vand.u32 4294901760, %v1309_v37  ;;  %v1089_v12 = vand.u32 4294901760, %v1088_v51  ;;  %v4132_v0 = vpack.c.bf16 %v5090_v14, %v5088_v15  ;;  %v6387_v51 = vld [vmem:[#allocation5_spill] sm:$0xff] }
  0x8e   :  { %4091 = vmatpush3.bf16.msra.mxu0 %v5422_v18  ;;  %v4122_v53 = vpack.c.bf16 %v1191_v11, %v1184_v26  ;;  %v1198_v20 = vand.u32 4294901760, %v1197_v31  ;;  %v1205_v42 = vand.u32 4294901760, %v1204_v32  ;;  %v4136_v2 = vpack.c.bf16 %v5124_v47, %v5122_v17  ;;  %v6390_v11 = vld [vmem:[#allocation6_spill] sm:$0xff]  ;;  %v6391_v31 = vld [vmem:[#allocation15_spill] sm:$0xff]  ;;  %v6392_v32 = vld [vmem:[#allocation16_spill] sm:$0xff] }
  0x8f   :  { %4115 = vmatpush3.bf16.msra.mxu1 %v4114_v8  ;;  %4093 = vmatprep.subr.bf16.mxu0 %v5424_v58  ;;  %v1317_v6 = vand.u32 4294901760, %v1316_v59  ;;  %v4130_v8 = vpack.c.bf16 %v5019_v63, %v5017_v46  ;;  %v4138_v37 = vpack.c.bf16 %v5143_v3, %v5141_v45  ;;  %v4140_v59 = vpack.c.bf16 %v5164_v27, %v5162_v25 }
  0x90   :  { %4117 = vmatprep.subr.bf16.mxu1 %v4116_v62  ;;  %v4134_v62 = vpack.c.bf16 %v5108_v38, %v5097_v40  ;;  %v4126_v21 = vpack.c.bf16 %v1205_v42, %v1198_v20  ;;  %v4142_v42 = vpack.c.bf16 %v5197_v61, %v5195_v52  ;;  %v4156_v20 = vpack.c.bf16 %v5388_v44, %v5385_v36 }
  0x91   :  { %v4124_v10 = vpack.c.bf16 %v1317_v6, %v1310_v23  ;;  %v6393_v23 = vld [vmem:[#allocation7_spill] sm:$0xff]  ;;  %v4150_v6 = vpack.c.bf16 %v5298_v29, %v5296_v49 }
  0x92   :  { %4095 = vmatpush3.bf16.msra.mxu0 %v5447_v30 }
  0x93   :  { %4119 = vmatpush3.bf16.msra.mxu1 %v4118_v7  ;;  %4129 = vmatprep.subr.bf16.mxu0 %v4128_v48  ;;  %v6388_v7 = vand.u32 4294901760, %v5127_v19  ;;  %v6389_v48 = vld [vmem:[#allocation13_spill] sm:$0xff] }
  0x94   :  { %4121 = vmatprep.subr.bf16.mxu1 %v4120_v28  ;;  %v4146_v26 = vpack.c.bf16 %v6389_v48, %v5250_v5  ;;  %v4148_v28 = vpack.c.bf16 %v6392_v32, %v6391_v31 }
  0x95   :  { %1090 = vmatmul.mubr.f32.vlgmr.msra.gmra.mrb[6].mxu0 %v1089_v12  ;;  %v6394_v12 = vld [vmem:[#allocation8_spill] sm:$0xff] }
  0x96   :  { %4131 = vmatpush3.bf16.msra.mxu0 %v4130_v8  ;;  %1457 = vmatprep.mubr.f32.mxu0 %v5127_v19  ;;  %v4152_v19 = vpack.c.bf16 %v5337_v57, %v5326_v24  ;;  %v6395_v8 = vld [vmem:[#allocation9_spill] sm:$0xff] }
  0x97   :  { %4123 = vmatpush3.bf16.msra.mxu1 %v4122_v53  ;;  %4133 = vmatprep.subr.bf16.mxu0 %v4132_v0  ;;  %v4154_v53 = vpack.c.bf16 %v5379_v39, %v5344_v60  ;;  %v6396_v0 = vld [vmem:[#allocation11_spill] sm:$0xff] }
  0x98   :  { %4125 = vmatprep.subr.bf16.mxu1 %v4124_v10  ;;  %v4144_v10 = vpack.c.bf16 %v5232_v9, %v5205_v34 }
  0x9a   :  { %4135 = vmatpush3.bf16.msra.mxu0 %v4134_v62  ;;  %v6397_v62 = vld [vmem:[#allocation12_spill] sm:$0xff] }
  0x9b   :  { %4127 = vmatpush3.bf16.msra.mxu1 %v4126_v21  ;;  %4137 = vmatprep.subr.bf16.mxu0 %v4136_v2  ;;  %v4158_v21 = vpack.c.bf16 %v5408_v22, %v5405_v56  ;;  %v6398_v2 = vand.u32 4294901760, %v5007_v33  ;;  %v99_v33 = vld [vmem:[%s6181_s1 + $0x280] sm:$0xff] }
  0x9c   :  { %4161 = vmatprep.subr.bf16.mxu1 %v5070_v54 }
  0x9e   :  { %1322 = vmatmul.mubr.f32.vlgmr.msra.gmra.mrb[6].mxu1 %v5365_v41  ;;  %4139 = vmatpush3.bf16.msra.mxu0 %v4138_v37  ;;  %v6399_v37 = vand.u32 4294901760, %v5015_v55  ;;  %v6405_v55 = vand.u32 4294901760, %v5097_v40  ;;  %v1894_v40 = vand.u32 4294901760, %v99_v33 }
  0x9f   :  { %4163 = vmatpush3.bf16.msra.mxu1 %v5082_v1  ;;  %4141 = vmatprep.subr.bf16.mxu0 %v4140_v59 }
  0xa0   :  { %4165 = vmatprep.subr.bf16.mxu1 %v6387_v51  ;;  %1564 = vmatprep.mubr.f32.mxu1 %v6388_v7  ;;  %v4192_v59 = vpack.c.bf16 %v6399_v37, %v6398_v2  ;;  %v6402_v7 = vand.u32 4294901760, %v5019_v63  ;;  %v84_v2 = vld [vmem:[%s6181_s1 + $0x208] sm:$0xff] }
  0xa2   :  { %4143 = vmatpush3.bf16.msra.mxu0 %v4142_v42  ;;  %v6400_v42 = vld [vmem:[#allocation14_spill] sm:$0xff] }
  0xa3   :  { %4167 = vmatpush3.bf16.msra.mxu1 %v6390_v11  ;;  %4145 = vmatprep.subr.bf16.mxu0 %v4144_v10  ;;  %v6401_v10 = vand.u32 4294901760, %v5017_v46  ;;  %v6406_v46 = vand.u32 4294901760, %v5108_v38  ;;  %v83_v38 = vld [vmem:[%s6181_s1 + $0x200] sm:$0xff] }
  0xa4   :  { %4169 = vmatprep.subr.bf16.mxu1 %v6393_v23 }
  0xa5   :  { %v4198_v63 = vpack.c.bf16 %v6406_v46, %v6405_v55  ;;  %v6415_v55 = vand.u32 4294901760, %v5197_v61  ;;  %v6419_v61 = vand.u32 4294901760, %v6389_v48  ;;  %v6423_v48 = vand.u32 4294901760, %v5298_v29  ;;  %v17_v29 = vld [vmem:[%s6180_s0 + $0x28] sm:$0xff] }
  0xa6   :  { %4147 = vmatpush3.bf16.msra.mxu0 %v4146_v26  ;;  %v4194_v26 = vpack.c.bf16 %v6402_v7, %v6401_v10  ;;  %v101_v10 = vld [vmem:[%s6181_s1 + $0x290] sm:$0xff]  ;;  %v102_v7 = vld [vmem:[%s6181_s1 + $0x298] sm:$0xff] }
  0xa7   :  { %4171 = vmatpush3.bf16.msra.mxu1 %v6394_v12  ;;  %4149 = vmatprep.subr.bf16.mxu0 %v4148_v28  ;;  %v6403_v28 = vand.u32 4294901760, %v5088_v15  ;;  %v6408_v15 = vand.u32 4294901760, %v5122_v17  ;;  %v6410_v17 = vand.u32 4294901760, %v5141_v45 }
  0xa8   :  { %4173 = vmatprep.subr.bf16.mxu1 %v6395_v8 }
  0xaa   :  { %4151 = vmatpush3.bf16.msra.mxu0 %v4150_v6  ;;  %v6404_v6 = vand.u32 4294901760, %v5090_v14  ;;  %v6409_v14 = vand.u32 4294901760, %v5124_v47  ;;  %v6411_v47 = vand.u32 4294901760, %v5143_v3  ;;  %v1849_v3 = vand.u32 4294901760, %v84_v2 }
  0xab   :  { %4175 = vmatpush3.bf16.msra.mxu1 %v6396_v0  ;;  %4153 = vmatprep.subr.bf16.mxu0 %v4152_v19 }
  0xac   :  { %4177 = vmatprep.subr.bf16.mxu1 %v6397_v62  ;;  %v4196_v19 = vpack.c.bf16 %v6404_v6, %v6403_v28  ;;  %v4202_v37 = vpack.c.bf16 %v6411_v47, %v6410_v17  ;;  %v6413_v28 = vand.u32 4294901760, %v5164_v27  ;;  %v1846_v6 = vand.u32 4294901760, %v83_v38 }
  0xad   :  { %v1903_v47 = vand.u32 4294901760, %v102_v7 }
  0xae   :  { %4155 = vmatpush3.bf16.msra.mxu0 %v4154_v53  ;;  %v6407_v53 = vld [vmem:[#allocation10_spill] sm:$0xff] }
  0xaf   :  { %4179 = vmatpush3.bf16.msra.mxu1 %v5262_v50  ;;  %4157 = vmatprep.subr.bf16.mxu0 %v4156_v20  ;;  %v4200_v20 = vpack.c.bf16 %v6409_v14, %v6408_v15  ;;  %v6417_v15 = vand.u32 4294901760, %v5232_v9  ;;  %v6421_v9 = vand.u32 4294901760, %v6392_v32  ;;  %v6424_v32 = vand.u32 4294901760, %v5326_v24 }
  0xb0   :  { %4181 = vmatprep.subr.bf16.mxu1 %v6400_v42  ;;  %v6426_v24 = vand.u32 4294901760, %v5344_v60  ;;  %v6430_v60 = vand.u32 4294901760, %v5408_v22  ;;  %v5648_v22 = vand.u32 4294901760, %v17_v29 }
  0xb2   :  { %4159 = vmatpush3.bf16.msra.mxu0 %v4158_v21  ;;  %v100_v21 = vld [vmem:[%s6181_s1 + $0x288] sm:$0xff]  ;;  %6432 = vst [vmem:[#allocation13_spill] sm:$0xff] %v5648_v22 }
  0xb3   :  { %4183 = vmatpush3.bf16.msra.mxu1 %v5290_v16  ;;  %4193 = vmatprep.subr.bf16.mxu0 %v4192_v59  ;;  %v1897_v59 = vand.u32 4294901760, %v100_v21 }
  0xb4   :  { %4185 = vmatprep.subr.bf16.mxu1 %v5335_v4 }
  0xb5   :  { %1460 = vmatmul.mubr.f32.vlgmr.msra.gmra.mrb[8].mxu0 %v5393_v35  ;;  %v5605_v35 = vsub.f32 %v83_v38, %v1846_v6 }
  0xb6   :  { %4195 = vmatpush3.bf16.msra.mxu0 %v4194_v26  ;;  %1734 = vmatprep.mubr.f32.mxu0 %v6407_v53  ;;  %v6412_v26 = vand.u32 4294901760, %v5162_v25  ;;  %v85_v25 = vld [vmem:[%s6181_s1 + $0x210] sm:$0xff] }
  0xb7   :  { %4187 = vmatpush3.bf16.msra.mxu1 %v5422_v18  ;;  %4197 = vmatprep.subr.bf16.mxu0 %v4196_v19  ;;  %v6414_v19 = vand.u32 4294901760, %v5195_v52  ;;  %v6418_v52 = vand.u32 4294901760, %v5250_v5  ;;  %v6422_v5 = vand.u32 4294901760, %v5296_v49  ;;  %v1852_v49 = vand.u32 4294901760, %v85_v25 }
  0xb8   :  { %4189 = vmatprep.subr.bf16.mxu1 %v5424_v58  ;;  %v4204_v45 = vpack.c.bf16 %v6413_v28, %v6412_v26  ;;  %v103_v26 = vld [vmem:[%s6181_s1 + $0x2a0] sm:$0xff]  ;;  %v104_v28 = vld [vmem:[%s6181_s1 + $0x2a8] sm:$0xff] }
  0xb9   :  { %v4206_v46 = vpack.c.bf16 %v6415_v55, %v6414_v19  ;;  %v4210_v27 = vpack.c.bf16 %v6419_v61, %v6418_v52  ;;  %v6425_v19 = vand.u32 4294901760, %v5337_v57  ;;  %v6427_v57 = vand.u32 4294901760, %v5379_v39 }
  0xba   :  { %4199 = vmatpush3.bf16.msra.mxu0 %v4198_v63  ;;  %v6416_v63 = vand.u32 4294901760, %v5205_v34  ;;  %v6420_v34 = vand.u32 4294901760, %v6391_v31  ;;  %v5594_v31 = vpack.c.bf16 %v6423_v48, %v6422_v5  ;;  %v1909_v38 = vand.u32 4294901760, %v104_v28 }
  0xbb   :  { %4191 = vmatpush3.bf16.msra.mxu1 %v5447_v30  ;;  %4201 = vmatprep.subr.bf16.mxu0 %v4200_v20  ;;  %v5566_v20 = vsub.f32 %v99_v33, %v1894_v40  ;;  %v1900_v33 = vand.u32 4294901760, %v101_v10  ;;  %v5600_v55 = vpack.c.bf16 %v6425_v19, %v6424_v32  ;;  %v5635_v61 = vsub.f32 %v102_v7, %v1903_v47  ;;  %v105_v7 = vld [vmem:[%s6181_s1 + $0x2b0] sm:$0xff] }
  0xbc   :  { %4225 = vmatprep.subr.bf16.mxu1 %v5070_v54  ;;  %v4208_v14 = vpack.c.bf16 %v6417_v15, %v6416_v63  ;;  %v86_v54 = vld [vmem:[%s6181_s1 + $0x218] sm:$0xff]  ;;  %v4212_v17 = vpack.c.bf16 %v6421_v9, %v6420_v34  ;;  %v5602_v63 = vsub.f32 %v100_v21, %v1897_v59  ;;  %v5617_v21 = vpack.c.bf16 %v6427_v57, %v6426_v24 }
  0xbd   :  { %v5633_v39 = vsub.f32 %v101_v10, %v1900_v33  ;;  %v5639_v34 = vpack.c.bf16 %v1849_v3, %v1846_v6  ;;  %v106_v6 = vld [vmem:[%s6181_s1 + $0x2b8] sm:$0xff]  ;;  %v6273_v5 = vand.u32 4294901760, %v5635_v61  ;;  %v5679_v48 = vsub.f32 %v17_v29, %v5648_v22 }
  0xbe   :  { %1568 = vmatmul.mubr.f32.vlgmr.msra.gmra.mrb[8].mxu1 %v1087_v13  ;;  %4203 = vmatpush3.bf16.msra.mxu0 %v4202_v37  ;;  %v5607_v13 = vsub.f32 %v84_v2, %v1849_v3  ;;  %v1855_v37 = vand.u32 4294901760, %v86_v54  ;;  %v6282_v2 = vand.u32 4294901760, %v5566_v20  ;;  %v6280_v36 = vand.u32 4294901760, %v5602_v63 }
  0xbf   :  { %4227 = vmatpush3.bf16.msra.mxu1 %v5082_v1  ;;  %4205 = vmatprep.subr.bf16.mxu0 %v4204_v45  ;;  %v1906_v1 = vand.u32 4294901760, %v103_v26  ;;  %v6428_v45 = vand.u32 4294901760, %v5388_v44  ;;  %6431 = vst [vmem:[#allocation5_spill] sm:$0xff] %v5639_v34  ;;  %v87_v44 = vld [vmem:[%s6181_s1 + $0x220] sm:$0xff] }
  0xc0   :  { %4229 = vmatprep.subr.bf16.mxu1 %v6387_v51  ;;  %1838 = vmatprep.mubr.f32.mxu1 %v6407_v53  ;;  %v6429_v51 = vand.u32 4294901760, %v5405_v56  ;;  %v5637_v53 = vpack.c.bf16 %v1897_v59, %v1894_v40  ;;  %v88_v56 = vld [vmem:[%s6181_s1 + $0x228] sm:$0xff]  ;;  %v5653_v40 = vpack.c.bf16 %v1855_v37, %v1852_v49  ;;  %v6279_v59 = vand.u32 4294901760, %v5605_v35 }
  0xc1   :  { %v5625_v15 = vpack.c.bf16 %v6428_v45, %v1308_v43  ;;  %v5651_v43 = vpack.c.bf16 %v1903_v47, %v1900_v33  ;;  %v6275_v10 = vand.u32 4294901760, %v5607_v13  ;;  %v5666_v3 = vsub.f32 %v86_v54, %v1855_v37 }
  0xc2   :  { %v5631_v52 = vpack.c.bf16 %v6430_v60, %v6429_v51  ;;  %4207 = vmatpush3.bf16.msra.mxu0 %v4206_v46  ;;  %6434 = vst [vmem:[#allocation15_spill] sm:$0xff] %v5653_v40  ;;  %v5668_v46 = vpack.c.bf16 %v1909_v38, %v1906_v1  ;;  %v1858_v9 = vand.u32 4294901760, %v87_v44  ;;  %v1861_v33 = vand.u32 4294901760, %v88_v56 }
  0xc3   :  { %4231 = vmatpush3.bf16.msra.mxu1 %v6390_v11  ;;  %4209 = vmatprep.subr.bf16.mxu0 %v4208_v14  ;;  %6433 = vst [vmem:[#allocation6_spill] sm:$0xff] %v5651_v43  ;;  %v5664_v11 = vsub.f32 %v85_v25, %v1852_v49  ;;  %v2073_v14 = vsub.f32 %v5566_v20, %v6282_v2  ;;  %v6274_v47 = vand.u32 4294901760, %v5633_v39  ;;  %v1912_v25 = vand.u32 4294901760, %v105_v7 }
  0xc4   :  { %4233 = vmatprep.subr.bf16.mxu1 %v6393_v23  ;;  %6435 = vst [vmem:[#allocation16_spill] sm:$0xff] %v5668_v46  ;;  %v2080_v23 = vsub.f32 %v5602_v63, %v6280_v36  ;;  %v1915_v54 = vand.u32 4294901760, %v106_v6  ;;  %v5682_v32 = vsub.f32 %v103_v26, %v1906_v1  ;;  %v1961_v19 = vsub.f32 %v5605_v35, %v6279_v59 }
  0xc5   :  { %v5691_v49 = vsub.f32 %v104_v28, %v1909_v38  ;;  %v2074_v37 = vand.u32 4294901760, %v2073_v14  ;;  %v6272_v26 = vand.u32 4294901760, %v5666_v3  ;;  %v5698_v29 = vpack.c.bf16 %v1861_v33, %v1858_v9  ;;  %v90_v28 = vld [vmem:[%s6181_s1 + $0x238] sm:$0xff] }
  0xc6   :  { %4211 = vmatpush3.bf16.msra.mxu0 %v4210_v27  ;;  %v1968_v27 = vsub.f32 %v5607_v13, %v6275_v10  ;;  %v5700_v24 = vsub.f32 %v87_v44, %v1858_v9  ;;  %v2087_v57 = vsub.f32 %v5633_v39, %v6274_v47  ;;  %v2081_v1 = vand.u32 4294901760, %v2080_v23 }
  0xc7   :  { %4235 = vmatpush3.bf16.msra.mxu1 %v6394_v12  ;;  %4213 = vmatprep.subr.bf16.mxu0 %v4212_v17  ;;  %v89_v12 = vld [vmem:[%s6181_s1 + $0x230] sm:$0xff]  ;;  %v6271_v17 = vand.u32 4294901760, %v5664_v11  ;;  %6436 = vst [vmem:[#allocation7_spill] sm:$0xff] %v5698_v29  ;;  %v5712_v38 = vsub.f32 %v88_v56, %v1861_v33  ;;  %v5714_v45 = vpack.c.bf16 %v1915_v54, %v1912_v25  ;;  %v6287_v51 = vand.u32 4294901760, %v5679_v48  ;;  %v108_v56 = vld [vmem:[%s6181_s1 + $0x2c8] sm:$0xff] }
  0xc8   :  { %4237 = vmatprep.subr.bf16.mxu1 %v6395_v8  ;;  %v2094_v8 = vsub.f32 %v5635_v61, %v6273_v5  ;;  %v1962_v60 = vand.u32 4294901760, %v1961_v19  ;;  %v1969_v44 = vand.u32 4294901760, %v1968_v27  ;;  %v5719_v14 = vsub.f32 %v105_v7, %v1912_v25 }
  0xc9   :  { %6437 = vst [vmem:[#allocation8_spill] sm:$0xff] %v5714_v45  ;;  %v1864_v9 = vand.u32 4294901760, %v89_v12  ;;  %v5728_v33 = vsub.f32 %v106_v6, %v1915_v54  ;;  %v1982_v7 = vsub.f32 %v5666_v3, %v6272_v26  ;;  %v2088_v23 = vand.u32 4294901760, %v2087_v57 }
  0xca   :  { %4215 = vmatpush3.bf16.msra.mxu0 %v5594_v31  ;;  %v107_v31 = vld [vmem:[%s6181_s1 + $0x2c0] sm:$0xff]  ;;  %v2095_v25 = vand.u32 4294901760, %v2094_v8  ;;  %v6277_v19 = vand.u32 4294901760, %v5682_v32  ;;  %v6276_v27 = vand.u32 4294901760, %v5691_v49  ;;  %v1921_v54 = vand.u32 4294901760, %v108_v56 }
  0xcb   :  { %4239 = vmatpush3.bf16.msra.mxu1 %v6396_v0  ;;  %4217 = vmatprep.subr.bf16.mxu0 %v5600_v55  ;;  %v1867_v0 = vand.u32 4294901760, %v90_v28  ;;  %v1975_v55 = vsub.f32 %v5664_v11, %v6271_v17  ;;  %v1918_v6 = vand.u32 4294901760, %v107_v31  ;;  %v91_v17 = vld [vmem:[%s6181_s1 + $0x240] sm:$0xff]  ;;  %v1944_v26 = vsub.f32 %v5679_v48, %v6287_v51 }
  0xcc   :  { %4241 = vmatprep.subr.bf16.mxu1 %v6397_v62  ;;  %v5739_v62 = vpack.c.bf16 %v2081_v1, %v2074_v37  ;;  %v5749_v57 = vpack.c.bf16 %v1969_v44, %v1962_v60  ;;  %v5751_v8 = vsub.f32 %v89_v12, %v1864_v9  ;;  %v6281_v37 = vand.u32 4294901760, %v5712_v38  ;;  %v109_v44 = vld [vmem:[%s6181_s1 + $0x2d0] sm:$0xff] }
  0xcd   :  { %v5756_v1 = vpack.c.bf16 %v1867_v0, %v1864_v9  ;;  %v5758_v5 = vsub.f32 %v90_v28, %v1867_v0  ;;  %v1976_v47 = vand.u32 4294901760, %v1975_v55  ;;  %v1983_v10 = vand.u32 4294901760, %v1982_v7  ;;  %v110_v9 = vld [vmem:[%s6181_s1 + $0x2d8] sm:$0xff] }
  0xce   :  { %4219 = vmatpush3.bf16.msra.mxu0 %v5617_v21  ;;  %v6278_v21 = vand.u32 4294901760, %v5700_v24  ;;  %v2101_v12 = vsub.f32 %v5682_v32, %v6277_v19  ;;  %v1870_v60 = vand.u32 4294901760, %v91_v17  ;;  %v5772_v28 = vpack.c.bf16 %v1921_v54, %v1918_v6 }
  0xcf   :  { %4243 = vmatpush3.bf16.msra.mxu1 %v5262_v50  ;;  %4221 = vmatprep.subr.bf16.mxu0 %v5625_v15  ;;  %6438 = vst [vmem:[#allocation9_spill] sm:$0xff] %v5756_v1  ;;  %v92_v50 = vld [vmem:[%s6181_s1 + $0x248] sm:$0xff]  ;;  %v5763_v15 = vpack.c.bf16 %v2095_v25, %v2088_v23  ;;  %v6283_v0 = vand.u32 4294901760, %v5719_v14  ;;  %v6284_v55 = vand.u32 4294901760, %v5728_v33  ;;  %v1945_v7 = vand.u32 4294901760, %v1944_v26 }
  0xd0   :  { %4245 = vmatprep.subr.bf16.mxu1 %v6400_v42  ;;  %v2108_v42 = vsub.f32 %v5691_v49, %v6276_v27  ;;  %6439 = vst [vmem:[#allocation11_spill] sm:$0xff] %v5772_v28  ;;  %v1873_v23 = vand.u32 4294901760, %v92_v50  ;;  %v1989_v25 = vsub.f32 %v5700_v24, %v6278_v21  ;;  %v1996_v27 = vsub.f32 %v5712_v38, %v6281_v37 }
  0xd1   :  { %v5793_v19 = vpack.c.bf16 %v1983_v10, %v1976_v47  ;;  %v5795_v26 = vsub.f32 %v108_v56, %v1921_v54  ;;  %v2102_v21 = vand.u32 4294901760, %v2101_v12  ;;  %v1924_v36 = vand.u32 4294901760, %v109_v44 }
  0xd2   :  { %4223 = vmatpush3.bf16.msra.mxu0 %v5631_v52  ;;  %v5784_v52 = vsub.f32 %v107_v31, %v1918_v6  ;;  %v6285_v31 = vand.u32 4294901760, %v5751_v8  ;;  %v6286_v6 = vand.u32 4294901760, %v5758_v5  ;;  %v2109_v59 = vand.u32 4294901760, %v2108_v42 }
  0xd3   :  { %4247 = vmatpush3.bf16.msra.mxu1 %v5290_v16  ;;  %4257 = vmatprep.subr.bf16.mxu0 %v5637_v53  ;;  %v93_v16 = vld [vmem:[%s6181_s1 + $0x250] sm:$0xff]  ;;  %v1927_v37 = vand.u32 4294901760, %v110_v9  ;;  %v5807_v10 = vsub.f32 %v91_v17, %v1870_v60  ;;  %v2115_v47 = vsub.f32 %v5719_v14, %v6283_v0  ;;  %v2122_v56 = vsub.f32 %v5728_v33, %v6284_v55 }
  0xd4   :  { %4249 = vmatprep.subr.bf16.mxu1 %v5335_v4  ;;  %v94_v4 = vld [vmem:[%s6181_s1 + $0x258] sm:$0xff]  ;;  %v5817_v54 = vpack.c.bf16 %v1873_v23, %v1870_v60  ;;  %v1990_v12 = vand.u32 4294901760, %v1989_v25  ;;  %v1997_v42 = vand.u32 4294901760, %v1996_v27  ;;  %v1876_v2 = vand.u32 4294901760, %v93_v16  ;;  %v112_v27 = vld [vmem:[%s6181_s1 + $0x2e8] sm:$0xff] }
  0xd5   :  { %1736 = vmatmul.mubr.f32.vlgmr.msra.gmra.mrb[10].mxu0 %v5365_v41  ;;  %v1879_v17 = vand.u32 4294901760, %v94_v4  ;;  %v2003_v0 = vsub.f32 %v5751_v8, %v6285_v31  ;;  %v6292_v60 = vand.u32 4294901760, %v5784_v52  ;;  %v5835_v25 = vsub.f32 %v92_v50, %v1873_v23  ;;  %v5854_v31 = vld [vmem:[%s6181_s1 + $0x260] sm:$0xff] }
  0xd6   :  { %4259 = vmatpush3.bf16.msra.mxu0 %v5639_v34  ;;  %1946 = vmatprep.mubr.f32.mxu0 %v1945_v7  ;;  %v2010_v7 = vsub.f32 %v5758_v5, %v6286_v6  ;;  %v5837_v55 = vpack.c.bf16 %v1927_v37, %v1924_v36  ;;  %v5841_v6 = vsub.f32 %v109_v44, %v1924_v36  ;;  %v2123_v34 = vand.u32 4294901760, %v2122_v56 }
  0xd7   :  { %4251 = vmatpush3.bf16.msra.mxu1 %v5422_v18  ;;  %4261 = vmatprep.subr.bf16.mxu0 %v5651_v43  ;;  %v111_v18 = vld [vmem:[%s6181_s1 + $0x2e0] sm:$0xff]  ;;  %v5843_v51 = vsub.f32 %v110_v9, %v1927_v37  ;;  %v2116_v43 = vand.u32 4294901760, %v2115_v47  ;;  %v1933_v23 = vand.u32 4294901760, %v112_v27  ;;  %v5857_v36 = vpack.c.bf16 %v1879_v17, %v1876_v2  ;;  %v5865_v9 = vld [vmem:[%s6181_s1 + $0x268] sm:$0xff] }
  0xd8   :  { %4253 = vmatprep.subr.bf16.mxu1 %v5424_v58  ;;  %v5833_v58 = vpack.c.bf16 %v2109_v59, %v2102_v21  ;;  %6440 = vst [vmem:[#allocation12_spill] sm:$0xff] %v5841_v6  ;;  %v5847_v59 = vpack.c.bf16 %v1997_v42, %v1990_v12  ;;  %v5849_v21 = vsub.f32 %v93_v16, %v1876_v2  ;;  %v1930_v50 = vand.u32 4294901760, %v111_v18  ;;  %v5882_v12 = vld [vmem:[%s6181_s1 + $0x2f8] sm:$0xff] }
  0xd9   :  { %6441 = vst [vmem:[#allocation14_spill] sm:$0xff] %v5843_v51  ;;  %v2004_v37 = vand.u32 4294901760, %v2003_v0  ;;  %v2011_v44 = vand.u32 4294901760, %v2010_v7  ;;  %v5867_v16 = vsub.f32 %v94_v4, %v1879_v17  ;;  %v6442_v47 = vand.u32 4294901760, %v5795_v26  ;;  %v5877_v0 = vld [vmem:[%s6181_s1 + $0x2f0] sm:$0xff] }
  0xda   :  { %4263 = vmatpush3.bf16.msra.mxu0 %v5653_v40  ;;  %v4300_v4 = vpack.c.bf16 %v2123_v34, %v2116_v43  ;;  %v1882_v42 = vand.u32 4294901760, %v5854_v31  ;;  %v1885_v34 = vand.u32 4294901760, %v5865_v9  ;;  %v1936_v17 = vand.u32 4294901760, %v5877_v0 }
  0xdb   :  { %4255 = vmatpush3.bf16.msra.mxu1 %v5447_v30  ;;  %4265 = vmatprep.subr.bf16.mxu0 %v5668_v46  ;;  %v2129_v30 = vsub.f32 %v5784_v52, %v6292_v60  ;;  %v2136_v56 = vsub.f32 %v5795_v26, %v6442_v47  ;;  %v16_v47 = vld [vmem:[%s6180_s0 + $0x20] sm:$0xff]  ;;  %v5894_v60 = vpack.c.bf16 %v1933_v23, %v1930_v50  ;;  %v1939_v2 = vand.u32 4294901760, %v5882_v12 }
  0xdc   :  { %4289 = vmatprep.subr.bf16.mxu1 %v5739_v62  ;;  %v5898_v62 = vsub.f32 %v112_v27, %v1933_v23  ;;  %v4302_v43 = vpack.c.bf16 %v2011_v44, %v2004_v37  ;;  %v6444_v23 = vand.u32 4294901760, %v5835_v25  ;;  %v5921_v44 = vand.u32 4294901760, %v16_v47 }
  0xdd   :  { %v2130_v7 = vand.u32 4294901760, %v2129_v30  ;;  %v2137_v27 = vand.u32 4294901760, %v2136_v56  ;;  %v6445_v30 = vand.u32 4294901760, %v5841_v6 }
  0xde   :  { %1840 = vmatmul.mubr.f32.vlgmr.msra.gmra.mrb[10].mxu1 %v5365_v41  ;;  %4267 = vmatpush3.bf16.msra.mxu0 %v5698_v29  ;;  %v5896_v41 = vsub.f32 %v111_v18, %v1930_v50  ;;  %v5912_v18 = vld [vmem:[%s6181_s1 + $0x278] sm:$0xff]  ;;  %v2024_v37 = vsub.f32 %v5835_v25, %v6444_v23  ;;  %v6446_v29 = vand.u32 4294901760, %v5843_v51  ;;  %v5935_v23 = vsub.f32 %v5854_v31, %v1882_v42 }
  0xdf   :  { %4291 = vmatpush3.bf16.msra.mxu1 %v5749_v57  ;;  %4269 = vmatprep.subr.bf16.mxu0 %v5714_v45  ;;  %v5907_v57 = vld [vmem:[%s6181_s1 + $0x270] sm:$0xff]  ;;  %v2143_v45 = vsub.f32 %v5841_v6, %v6445_v30  ;;  %v1891_v46 = vand.u32 4294901760, %v5912_v18  ;;  %v6311_v31 = vand.u32 4294901760, %v5898_v62 }
  0xe0   :  { %4293 = vmatprep.subr.bf16.mxu1 %v5763_v15  ;;  %2182 = vmatprep.mubr.f32.mxu1 %v5648_v22  ;;  %v6443_v15 = vand.u32 4294901760, %v5807_v10  ;;  %v2150_v56 = vsub.f32 %v5843_v51, %v6446_v29  ;;  %v1888_v30 = vand.u32 4294901760, %v5907_v57  ;;  %v5944_v29 = vsub.f32 %v5877_v0, %v1936_v17 }
  0xe1   :  { %v4304_v22 = vpack.c.bf16 %v2137_v27, %v2130_v7  ;;  %v5952_v51 = vsub.f32 %v16_v47, %v5921_v44  ;;  %v2144_v6 = vand.u32 4294901760, %v2143_v45  ;;  %v6447_v0 = vand.u32 4294901760, %v5849_v21 }
  0xe2   :  { %v2017_v50 = vsub.f32 %v5807_v10, %v6443_v15  ;;  %4271 = vmatpush3.bf16.msra.mxu0 %v5756_v1  ;;  %v5938_v1 = vsub.f32 %v5865_v9, %v1885_v34  ;;  %v5947_v15 = vsub.f32 %v5882_v12, %v1939_v2  ;;  %v2025_v9 = vand.u32 4294901760, %v2024_v37 }
  0xe3   :  { %4295 = vmatpush3.bf16.msra.mxu1 %v5793_v19  ;;  %4273 = vmatprep.subr.bf16.mxu0 %v5772_v28  ;;  %v2031_v40 = vsub.f32 %v5849_v21, %v6447_v0  ;;  %v6448_v12 = vand.u32 4294901760, %v5867_v16  ;;  %v5964_v7 = vsub.f32 %v5907_v57, %v1888_v30  ;;  %v5967_v47 = vsub.f32 %v5912_v18, %v1891_v46 }
  0xe4   :  { %4297 = vmatprep.subr.bf16.mxu1 %v5833_v58  ;;  %v2018_v28 = vand.u32 4294901760, %v2017_v50  ;;  %v2151_v58 = vand.u32 4294901760, %v2150_v56  ;;  %v6449_v50 = vand.u32 4294901760, %v5896_v41  ;;  %v6313_v57 = vand.u32 4294901760, %v5947_v15 }
  0xe5   :  { %v2038_v19 = vsub.f32 %v5867_v16, %v6448_v12  ;;  %v5979_v0 = vpack.c.bf16 %v1885_v34, %v1882_v42  ;;  %v5981_v18 = vpack.c.bf16 %v1939_v2, %v1936_v17  ;;  %v1949_v12 = vand.u32 4294901760, %v5952_v51 }
  0xe6   :  { %4275 = vmatpush3.bf16.msra.mxu0 %v5817_v54  ;;  %v2157_v37 = vsub.f32 %v5896_v41, %v6449_v50  ;;  %v4308_v27 = vpack.c.bf16 %v2151_v58, %v2144_v6  ;;  %v2032_v45 = vand.u32 4294901760, %v2031_v40  ;;  %v6451_v42 = vand.u32 4294901760, %v5938_v1 }
  0xe7   :  { %4299 = vmatpush3.bf16.msra.mxu1 %v5847_v59  ;;  %4277 = vmatprep.subr.bf16.mxu0 %v5837_v55  ;;  %v2164_v59 = vsub.f32 %v5898_v62, %v6311_v31  ;;  %v2039_v50 = vand.u32 4294901760, %v2038_v19  ;;  %v6450_v31 = vand.u32 4294901760, %v5935_v23  ;;  %v6312_v17 = vand.u32 4294901760, %v5964_v7 }
  0xe8   :  { %4301 = vmatprep.subr.bf16.mxu1 %v4300_v4  ;;  %v4306_v4 = vpack.c.bf16 %v2025_v9, %v2018_v28  ;;  %v2052_v2 = vsub.f32 %v5938_v1, %v6451_v42  ;;  %v6314_v34 = vand.u32 4294901760, %v5967_v47  ;;  %v2158_v28 = vand.u32 4294901760, %v2157_v37 }
  0xe9   :  { %v2045_v56 = vsub.f32 %v5935_v23, %v6450_v31  ;;  %v2165_v6 = vand.u32 4294901760, %v2164_v59  ;;  %v6452_v40 = vand.u32 4294901760, %v5944_v29  ;;  %v2178_v19 = vsub.f32 %v5947_v15, %v6313_v57 }
  0xea   :  { %4279 = vmatpush3.bf16.msra.mxu0 %v5857_v36  ;;  %v1950_v31 = vsub.f32 %v5952_v51, %v1949_v12  ;;  %v6004_v9 = vpack.c.bf16 %v1891_v46, %v1888_v30  ;;  %v4310_v58 = vpack.c.bf16 %v2039_v50, %v2032_v45  ;;  %v2053_v59 = vand.u32 4294901760, %v2052_v2 }
  0xeb   :  { %4303 = vmatpush3.bf16.msra.mxu1 %v4302_v43  ;;  %4281 = vmatprep.subr.bf16.mxu0 %v5894_v60  ;;  %v2171_v43 = vsub.f32 %v5944_v29, %v6452_v40  ;;  %v2046_v37 = vand.u32 4294901760, %v2045_v56  ;;  %v2059_v42 = vsub.f32 %v5964_v7, %v6312_v17  ;;  %v2066_v40 = vsub.f32 %v5967_v47, %v6314_v34 }
  0xec   :  { %4305 = vmatprep.subr.bf16.mxu1 %v4304_v22  ;;  %v4320_v22 = vpack.c.bf16 %v5602_v63, %v5566_v20  ;;  %v4312_v46 = vpack.c.bf16 %v2165_v6, %v2158_v28  ;;  %v2179_v45 = vand.u32 4294901760, %v2178_v19  ;;  %v1951_v50 = vand.u32 4294901760, %v1950_v31  ;;  %v6454_v31 = vld [vmem:[#allocation6_spill] sm:$0xff] }
  0xed   :  { %v2172_v30 = vand.u32 4294901760, %v2171_v43  ;;  %v4314_v56 = vpack.c.bf16 %v2053_v59, %v2046_v37  ;;  %v4324_v2 = vpack.c.bf16 %v5635_v61, %v5633_v39  ;;  %v2060_v17 = vand.u32 4294901760, %v2059_v42  ;;  %v6456_v37 = vld [vmem:[#allocation15_spill] sm:$0xff]  ;;  %v6457_v59 = vld [vmem:[#allocation12_spill] sm:$0xff]  ;;  %v6458_v42 = vld [vmem:[#allocation14_spill] sm:$0xff] }
  0xee   :  { %4283 = vmatpush3.bf16.msra.mxu0 %v5979_v0  ;;  %v2067_v57 = vand.u32 4294901760, %v2066_v40  ;;  %v4328_v6 = vpack.c.bf16 %v5691_v49, %v5682_v32  ;;  %v4330_v43 = vpack.c.bf16 %v5712_v38, %v5700_v24  ;;  %v4332_v19 = vpack.c.bf16 %v5728_v33, %v5719_v14 }
  0xef   :  { %4307 = vmatpush3.bf16.msra.mxu1 %v4306_v4  ;;  %4285 = vmatprep.subr.bf16.mxu0 %v5981_v18  ;;  %v4322_v4 = vpack.c.bf16 %v5607_v13, %v5605_v35  ;;  %v4316_v34 = vpack.c.bf16 %v2179_v45, %v2172_v30  ;;  %v4340_v40 = vpack.c.bf16 %v6458_v42, %v6457_v59  ;;  %v6460_v45 = vld [vmem:[#allocation7_spill] sm:$0xff] }
  0xf0   :  { %4309 = vmatprep.subr.bf16.mxu1 %v4308_v27  ;;  %v4326_v27 = vpack.c.bf16 %v5666_v3, %v5664_v11  ;;  %v4318_v28 = vpack.c.bf16 %v2067_v57, %v2060_v17  ;;  %v4334_v57 = vpack.c.bf16 %v5758_v5, %v5751_v8  ;;  %v6453_v17 = vld [vmem:[#allocation5_spill] sm:$0xff]  ;;  %v4342_v30 = vpack.c.bf16 %v5867_v16, %v5849_v21 }
  0xf2   :  { %4287 = vmatpush3.bf16.msra.mxu0 %v6004_v9 }
  0xf3   :  { %4311 = vmatpush3.bf16.msra.mxu1 %v4310_v58  ;;  %4321 = vmatprep.subr.bf16.mxu0 %v4320_v22  ;;  %v6455_v58 = vand.u32 4294901760, %v5679_v48  ;;  %v4338_v22 = vpack.c.bf16 %v5835_v25, %v5807_v10 }
  0xf4   :  { %4313 = vmatprep.subr.bf16.mxu1 %v4312_v46  ;;  %v6459_v46 = vld [vmem:[#allocation16_spill] sm:$0xff] }
  0xf5   :  { %1952 = vmatmul.mubr.f32.vlgmr.msra.gmra.mrb[12].mxu0 %v1951_v50  ;;  %v6461_v50 = vld [vmem:[#allocation8_spill] sm:$0xff] }
  0xf6   :  { %4323 = vmatpush3.bf16.msra.mxu0 %v4322_v4  ;;  %2319 = vmatprep.mubr.f32.mxu0 %v5679_v48  ;;  %v4344_v48 = vpack.c.bf16 %v5898_v62, %v5896_v41 }
  0xf7   :  { %4315 = vmatpush3.bf16.msra.mxu1 %v4314_v56  ;;  %4325 = vmatprep.subr.bf16.mxu0 %v4324_v2  ;;  %v4346_v2 = vpack.c.bf16 %v5938_v1, %v5935_v23 }
  0xf8   :  { %4317 = vmatprep.subr.bf16.mxu1 %v4316_v34  ;;  %v4336_v34 = vpack.c.bf16 %v5795_v26, %v5784_v52 }
  0xfa   :  { %4327 = vmatpush3.bf16.msra.mxu0 %v4326_v27 }
  0xfb   :  { %4319 = vmatpush3.bf16.msra.mxu1 %v4318_v28  ;;  %4329 = vmatprep.subr.bf16.mxu0 %v4328_v6  ;;  %v6462_v28 = vld [vmem:[#allocation9_spill] sm:$0xff]  ;;  %v4348_v6 = vpack.c.bf16 %v5947_v15, %v5944_v29 }
  0xfc   :  { %4353 = vmatprep.subr.bf16.mxu1 %v5637_v53 }
  0xfe   :  { %2184 = vmatmul.mubr.f32.vlgmr.msra.gmra.mrb[12].mxu1 %v5921_v44  ;;  %4331 = vmatpush3.bf16.msra.mxu0 %v4330_v43  ;;  %v6463_v43 = vld [vmem:[#allocation11_spill] sm:$0xff] }
  0xff   :  { %4355 = vmatpush3.bf16.msra.mxu1 %v6453_v17  ;;  %4333 = vmatprep.subr.bf16.mxu0 %v4332_v19  ;;  %v4350_v19 = vpack.c.bf16 %v5967_v47, %v5964_v7 }
 0x100   :  { %4357 = vmatprep.subr.bf16.mxu1 %v6454_v31  ;;  %2426 = vmatprep.mubr.f32.mxu1 %v6455_v58 }
 0x102   :  { %4335 = vmatpush3.bf16.msra.mxu0 %v4334_v57  ;;  %v6464_v57 = vand.u32 4294901760, %v5566_v20  ;;  %v6469_v20 = vand.u32 4294901760, %v5635_v61  ;;  %v6474_v61 = vand.u32 4294901760, %v5691_v49  ;;  %v6480_v49 = vand.u32 4294901760, %v5758_v5 }
 0x103   :  { %4359 = vmatpush3.bf16.msra.mxu1 %v6456_v37  ;;  %4337 = vmatprep.subr.bf16.mxu0 %v4336_v34  ;;  %v6465_v34 = vand.u32 4294901760, %v5602_v63  ;;  %v6485_v5 = vand.u32 4294901760, %v6457_v59  ;;  %v18_v59 = vld [vmem:[%s6180_s0 + $0x30] sm:$0xff]  ;;  %s4507_s0 = smov [#allocation2]  }
 0x104   :  { %4361 = vmatprep.subr.bf16.mxu1 %v6459_v46 }
 0x105   :  { %v4384_v58 = vpack.c.bf16 %v6465_v34, %v6464_v57  ;;  %v6472_v57 = vld [vmem:[#allocation13_spill] sm:$0xff] }
 0x106   :  { %4339 = vmatpush3.bf16.msra.mxu0 %v4338_v22 }
 0x107   :  { %4363 = vmatpush3.bf16.msra.mxu1 %v6460_v45  ;;  %4341 = vmatprep.subr.bf16.mxu0 %v4340_v40 }
 0x108   :  { %4365 = vmatprep.subr.bf16.mxu1 %v6461_v50  ;;  %v3214_v4 = vpop.f32.mrb[0].mxu0 }
 0x109   :  { %v3215_v56 = vpop.f32.mrb[1].mxu0 }
 0x10a   :  { %4343 = vmatpush3.bf16.msra.mxu0 %v4342_v30  ;;  %v3216_v27 = vadd.f32 %v3215_v56, %v3214_v4  ;;  %v6466_v30 = vand.u32 4294901760, %v5605_v35  ;;  %v6470_v35 = vand.u32 4294901760, %v5664_v11  ;;  %v6476_v11 = vand.u32 4294901760, %v5712_v38 }
 0x10b   :  { %4367 = vmatpush3.bf16.msra.mxu1 %v6462_v28  ;;  %4345 = vmatprep.subr.bf16.mxu0 %v4344_v48  ;;  %v6467_v48 = vand.u32 4294901760, %v5607_v13  ;;  %v6471_v13 = vand.u32 4294901760, %v5666_v3  ;;  %v6477_v3 = vand.u32 4294901760, %v5719_v14  ;;  %v6481_v38 = vand.u32 4294901760, %v5784_v52 }
 0x10c   :  { %4369 = vmatprep.subr.bf16.mxu1 %v6463_v43  ;;  %v6482_v14 = vand.u32 4294901760, %v5795_v26  ;;  %v6486_v52 = vand.u32 4294901760, %v6458_v42  ;;  %v6487_v26 = vand.u32 4294901760, %v5849_v21 }
 0x10d   :  { %v4386_v4 = vpack.c.bf16 %v6467_v48, %v6466_v30  ;;  %v119_v48 = vsel %vm117_vm0, %v18_v59, 0 }
 0x10e   :  { %4347 = vmatpush3.bf16.msra.mxu0 %v4346_v2  ;;  %v6468_v2 = vand.u32 4294901760, %v5633_v39  ;;  %v6473_v39 = vand.u32 4294901760, %v5682_v32  ;;  %v6479_v32 = vand.u32 4294901760, %v5751_v8 }
 0x10f   :  { %4371 = vmatpush3.bf16.msra.mxu1 %v5817_v54  ;;  %4349 = vmatprep.subr.bf16.mxu0 %v4348_v6 }
 0x110   :  { %4373 = vmatprep.subr.bf16.mxu1 %v5837_v55  ;;  %v4388_v63 = vpack.c.bf16 %v6469_v20, %v6468_v2  ;;  %v4392_v34 = vpack.c.bf16 %v6474_v61, %v6473_v39 }
 0x111   :  { %v3249_v22 = vpop.f32.mrb[0].mxu1 }
 0x112   :  { %v3250_v40 = vpop.f32.mrb[1].mxu1  ;;  %4351 = vmatpush3.bf16.msra.mxu0 %v4350_v19  ;;  %v4390_v19 = vpack.c.bf16 %v6471_v13, %v6470_v35  ;;  %v2774_v35 = vand.u32 4294901760, %v119_v48 }
 0x113   :  { %v3251_v56 = vadd.f32 %v3250_v40, %v3249_v22  ;;  %4375 = vmatpush3.bf16.msra.mxu1 %v5857_v36  ;;  %4385 = vmatprep.subr.bf16.mxu0 %v4384_v58  ;;  %v6478_v22 = vand.u32 4294901760, %v5728_v33  ;;  %v4400_v33 = vpack.c.bf16 %v6482_v14, %v6481_v38 }
 0x114   :  { %4377 = vmatprep.subr.bf16.mxu1 %v5894_v60 }
 0x115   :  { %v462_v6 = vadd.f32 %v3251_v56, %v3216_v27  ;;  %2322 = vmatmul.mubr.f32.vlgmr.msra.gmra.mrb[14].mxu0 %v5952_v51  ;;  %v6475_v27 = vand.u32 4294901760, %v5700_v24  ;;  %v4396_v40 = vpack.c.bf16 %v6478_v22, %v6477_v3  ;;  %v4398_v24 = vpack.c.bf16 %v6480_v49, %v6479_v32 }
 0x116   :  { %4387 = vmatpush3.bf16.msra.mxu0 %v4386_v4  ;;  %2596 = vmatprep.mubr.f32.mxu0 %v6472_v57  ;;  %v6484_v51 = vand.u32 4294901760, %v5835_v25  ;;  %v6490_v25 = vand.u32 4294901760, %v5898_v62  ;;  %v6491_v62 = vand.u32 4294901760, %v5935_v23  ;;  %v6494_v4 = vand.u32 4294901760, %v5947_v15 }
 0x117   :  { %4379 = vmatpush3.bf16.msra.mxu1 %v5979_v0  ;;  %4389 = vmatprep.subr.bf16.mxu0 %v4388_v63  ;;  %v4394_v58 = vpack.c.bf16 %v6476_v11, %v6475_v27  ;;  %v6495_v23 = vand.u32 4294901760, %v5964_v7  ;;  %v4504_v7 = vmov 0.0|0.0  }
 0x118   :  { %4381 = vmatprep.subr.bf16.mxu1 %v5981_v18 }
 0x11a   :  { %4391 = vmatpush3.bf16.msra.mxu0 %v4390_v19 }
 0x11b   :  { %4383 = vmatpush3.bf16.msra.mxu1 %v6004_v9  ;;  %4393 = vmatprep.subr.bf16.mxu0 %v4392_v34 }
 0x11c   :  { %4417 = vmatprep.subr.bf16.mxu1 %v5637_v53  ;;  %v6483_v53 = vand.u32 4294901760, %v5807_v10  ;;  %v6489_v10 = vand.u32 4294901760, %v5896_v41  ;;  %v116_v41 = vld [vmem:[%s6181_s1 + $0x308] sm:$0xff] }
 0x11d   :  { %v2711_v63 = vand.u32 4294901760, %v116_v41 }
 0x11e   :  { %2430 = vmatmul.mubr.f32.vlgmr.msra.gmra.mrb[14].mxu1 %v1949_v12  ;;  %4395 = vmatpush3.bf16.msra.mxu0 %v4394_v58  ;;  %v4402_v8 = vpack.c.bf16 %v6484_v51, %v6483_v53  ;;  %v4404_v12 = vpack.c.bf16 %v6486_v52, %v6485_v5 }
 0x11f   :  { %4419 = vmatpush3.bf16.msra.mxu1 %v6453_v17  ;;  %4397 = vmatprep.subr.bf16.mxu0 %v4396_v40  ;;  %v6488_v17 = vand.u32 4294901760, %v5867_v16  ;;  %v115_v16 = vld [vmem:[%s6181_s1 + $0x300] sm:$0xff]  ;;  %s3174_s1 = sshll.u32 %s4507_s0, 4  ;;  %s3175_s1 = int_to_ptr.vmem [resolvable:$true] %s3174_s1 }
 0x120   :  { %4421 = vmatprep.subr.bf16.mxu1 %v6454_v31  ;;  %2700 = vmatprep.mubr.f32.mxu1 %v6472_v57  ;;  %v2708_v20 = vand.u32 4294901760, %v115_v16  ;;  %s4480_s23 = scalar_lea.vmem %s3175_s1, 128  ;;  %p4485_p1 = scmp.lt.s32.totalorder %s3175_s1, %s3175_s1 }
 0x121   :  { %v4406_v31 = vpack.c.bf16 %v6488_v17, %v6487_v26  ;;  %p4481_p0 = scmp.ne.s32.totalorder %s3175_s1, %s4480_s23  ;;  %p4486_p2 = scmp.lt.s32.totalorder %s4480_s23, %s4480_s23 }
 0x122   :  { %4399 = vmatpush3.bf16.msra.mxu0 %v4398_v24  ;;  %v2786_v19 = vsub.f32 %v115_v16, %v2708_v20 }
 0x123   :  { %4423 = vmatpush3.bf16.msra.mxu1 %v6456_v37  ;;  %4401 = vmatprep.subr.bf16.mxu0 %v4400_v33  ;;  %v4408_v37 = vpack.c.bf16 %v6490_v25, %v6489_v10  ;;  %p4487_p3 = por %p4486_p2, %p4485_p1 }
 0x124   :  { %4425 = vmatprep.subr.bf16.mxu1 %v6459_v46  ;;  %v2787_v57 = vand.u32 4294901760, %v2786_v19 }
 0x125   :  { %p4488_p4 = pnand %p4487_p3, %p4481_p0 }
 0x126   :  { %4403 = vmatpush3.bf16.msra.mxu0 %v4402_v8  ;;  %v2788_v27 = vsub.f32 %v2786_v19, %v2787_v57 }
 0x127   :  { %4427 = vmatpush3.bf16.msra.mxu1 %v6460_v45  ;;  %4405 = vmatprep.subr.bf16.mxu0 %v4404_v12  ;;  %v6492_v45 = vand.u32 4294901760, %v5938_v1  ;;  %v6496_v1 = vand.u32 4294901760, %v5967_v47 }
 0x128   :  { %v3284_v42 = vpop.f32.mrb[2].mxu0  ;;  %4429 = vmatprep.subr.bf16.mxu1 %v6461_v50  ;;  %v6493_v50 = vand.u32 4294901760, %v5944_v29  ;;  %v2775_v29 = vsub.f32 %v119_v48, %v2774_v35 }
 0x129   :  { %v3285_v21 = vpop.f32.mrb[3].mxu0  ;;  %v4410_v30 = vpack.c.bf16 %v6492_v45, %v6491_v62  ;;  %v4414_v13 = vpack.c.bf16 %v6496_v1, %v6495_v23 }
 0x12a   :  { %v3286_v46 = vadd.f32 %v3285_v21, %v3284_v42  ;;  %4407 = vmatpush3.bf16.msra.mxu0 %v4406_v31  ;;  %v4412_v56 = vpack.c.bf16 %v6494_v4, %v6493_v50 }
 0x12b   :  { %4431 = vmatpush3.bf16.msra.mxu1 %v6462_v28  ;;  %4409 = vmatprep.subr.bf16.mxu0 %v4408_v37  ;;  %v2793_v28 = vsub.f32 %v116_v41, %v2711_v63 }
 0x12c   :  { %v600_v2 = vadd.f32 %v3286_v46, %v462_v6  ;;  %4433 = vmatprep.subr.bf16.mxu1 %v6463_v43  ;;  %v4449_v43 = vpack.c.bf16 %v2711_v63, %v2708_v20 }
 0x12d   :  { %v2794_v39 = vand.u32 4294901760, %v2793_v28 }
 0x12e   :  { %4411 = vmatpush3.bf16.msra.mxu0 %v4410_v30 }
 0x12f   :  { %4435 = vmatpush3.bf16.msra.mxu1 %v5817_v54  ;;  %4413 = vmatprep.subr.bf16.mxu0 %v4412_v56  ;;  %v2776_v54 = vand.u32 4294901760, %v2775_v29  ;;  %v4461_v34 = vpack.c.bf16 %v2794_v39, %v2787_v57  ;;  %v2795_v11 = vsub.f32 %v2793_v28, %v2794_v39 }
 0x130   :  { %4437 = vmatprep.subr.bf16.mxu1 %v5837_v55  ;;  %v4506_v55 = vmov 0.0  }
 0x131   :  { %v3319_v15 = vpop.f32.mrb[2].mxu1  ;;  %v2796_v58 = vand.u32 4294901760, %v2795_v11 }
 0x132   :  { %v3320_v6 = vpop.f32.mrb[3].mxu1  ;;  %4415 = vmatpush3.bf16.msra.mxu0 %v4414_v13 }
 0x133   :  { %v3321_v61 = vadd.f32 %v3320_v6, %v3319_v15  ;;  %4439 = vmatpush3.bf16.msra.mxu1 %v5857_v36  ;;  %4457 = vmatprep.subr.bf16.mxu0 %v4504_v7  ;;  %v2789_v36 = vand.u32 4294901760, %v2788_v27 }
 0x134   :  { %4441 = vmatprep.subr.bf16.mxu1 %v5894_v60  ;;  %v2777_v60 = vsub.f32 %v2775_v29, %v2776_v54 }
 0x135   :  { %v708_v47 = vadd.f32 %v3321_v61, %v600_v2  ;;  %2598 = vmatmul.mubr.f32.vlgmr.msra.gmra.mrb[16].mxu0 %v5921_v44 }
 0x136   :  { %4459 = vmatpush3.bf16.msra.mxu0 %v4449_v43  ;;  %3855 = vmatprep.mubr.msk.f32.mxu0 %vm4505_vm1, %v4506_v55  ;;  %v2778_v3 = vand.u32 4294901760, %v2777_v60 }
 0x137   :  { %4443 = vmatpush3.bf16.msra.mxu1 %v5979_v0  ;;  %4460 = vmatprep.subr.bf16.mxu0 %v4504_v7  ;;  %v4452_v0 = vpack.c.bf16 %v2796_v58, %v2789_v36 }
 0x138   :  { %4445 = vmatprep.subr.bf16.mxu1 %v5981_v18  ;;  %v4455_v18 = vpack.c.bf16 %v2793_v28, %v2786_v19 }
 0x139   :  { %3856 = vmatmul.mubr.f32.vlgmr.msra.gmra.mrb[18].mxu0 %v2776_v54 }
 0x13a   :  { %4462 = vmatpush3.bf16.msra.mxu0 %v4461_v34  ;;  %3862 = vmatprep.mubr.msk.f32.mxu0 %vm4505_vm1, %v4506_v55 }
 0x13b   :  { %4447 = vmatpush3.bf16.msra.mxu1 %v6004_v9  ;;  %4463 = vmatprep.subr.bf16.mxu0 %v4504_v7 }
 0x13c   :  { %4448 = vmatprep.subr.bf16.mxu1 %v4504_v7 }
 0x13e   :  { %2702 = vmatmul.mubr.f32.vlgmr.msra.gmra.mrb[16].mxu1 %v5921_v44 }
 0x13f   :  { %4450 = vmatpush3.bf16.msra.mxu1 %v4449_v43  ;;  %3834 = vmatprep.mubr.msk.f32.mxu1 %vm4505_vm1, %v4506_v55 }
 0x140   :  { %4451 = vmatprep.subr.bf16.mxu1 %v4504_v7 }
 0x141   :  { %3863 = vmatmul.mubr.f32.vlgmr.msra.gmra.mrb[18].mxu0 %v2774_v35 }
 0x142   :  { %3835 = vmatmul.mubr.f32.vlgmr.msra.gmra.mrb[18].mxu1 %v2778_v3  ;;  %4465 = vmatpush3.bf16.msra.mxu0 %v4449_v43 }
 0x143   :  { %4453 = vmatpush3.bf16.msra.mxu1 %v4452_v0  ;;  %3841 = vmatprep.mubr.msk.f32.mxu1 %vm4505_vm1, %v4506_v55 }
 0x144   :  { %3869 = vmatprep.mubr.msk.f32.mxu0 %vm4505_vm1, %v4506_v55  ;;  %4454 = vmatprep.subr.bf16.mxu1 %v4504_v7 }
 0x148   :  { %v3354_v9 = vpop.f32.mrb[4].mxu0 }
 0x149   :  { %v3355_v22 = vpop.f32.mrb[5].mxu0  ;;  %3870 = vmatmul.mubr.f32.vlgmr.msra.gmra.mrb[18].mxu0 %v2774_v35 }
 0x14a   :  { %v3356_v44 = vadd.f32 %v3355_v22, %v3354_v9  ;;  %3842 = vmatmul.mubr.f32.vlgmr.msra.gmra.mrb[18].mxu1 %v2774_v35 }
 0x14b   :  { %4456 = vmatpush3.bf16.msra.mxu1 %v4455_v18  ;;  %3848 = vmatprep.mubr.msk.f32.mxu1 %vm4505_vm1, %v4506_v55 }
 0x14c   :  { %v876_v40 = vadd.f32 %v3356_v44, %v708_v47 }
 0x151   :  { %v3389_v32 = vpop.f32.mrb[4].mxu1 }
 0x152   :  { %v3390_v49 = vpop.f32.mrb[5].mxu1  ;;  %3849 = vmatmul.mubr.f32.vlgmr.msra.gmra.mrb[18].mxu1 %v2775_v29 }
 0x153   :  { %v3391_v24 = vadd.f32 %v3390_v49, %v3389_v32 }
 0x155   :  { %v980_v38 = vadd.f32 %v3391_v24, %v876_v40 }
 0x168   :  { %v3424_v14 = vpop.f32.mrb[6].mxu0 }
 0x169   :  { %v3425_v33 = vpop.f32.mrb[7].mxu0 }
 0x16a   :  { %v3426_v53 = vadd.f32 %v3425_v33, %v3424_v14 }
 0x16c   :  { %v1092_v51 = vadd.f32 %v3426_v53, %v980_v38 }
 0x171   :  { %v3459_v8 = vpop.f32.mrb[6].mxu1 }
 0x172   :  { %v3460_v5 = vpop.f32.mrb[7].mxu1 }
 0x173   :  { %v3461_v52 = vadd.f32 %v3460_v5, %v3459_v8 }
 0x175   :  { %v1324_v12 = vadd.f32 %v3461_v52, %v1092_v51 }
 0x188   :  { %v3494_v26 = vpop.f32.mrb[8].mxu0 }
 0x189   :  { %v3495_v17 = vpop.f32.mrb[9].mxu0 }
 0x18a   :  { %v3496_v31 = vadd.f32 %v3495_v17, %v3494_v26 }
 0x18c   :  { %v1462_v10 = vadd.f32 %v3496_v31, %v1324_v12 }
 0x191   :  { %v3529_v25 = vpop.f32.mrb[8].mxu1 }
 0x192   :  { %v3530_v37 = vpop.f32.mrb[9].mxu1 }
 0x193   :  { %v3531_v59 = vadd.f32 %v3530_v37, %v3529_v25 }
 0x195   :  { %v1570_v42 = vadd.f32 %v3531_v59, %v1462_v10 }
 0x1a8   :  { %v3564_v21 = vpop.f32.mrb[10].mxu0 }
 0x1a9   :  { %v3565_v16 = vpop.f32.mrb[11].mxu0 }
 0x1aa   :  { %v3566_v41 = vadd.f32 %v3565_v16, %v3564_v21 }
 0x1ac   :  { %v1738_v46 = vadd.f32 %v3566_v41, %v1570_v42 }
 0x1b1   :  { %v3599_v62 = vpop.f32.mrb[10].mxu1 }
 0x1b2   :  { %v3600_v45 = vpop.f32.mrb[11].mxu1 }
 0x1b3   :  { %v3601_v30 = vadd.f32 %v3600_v45, %v3599_v62 }
 0x1b5   :  { %v1842_v48 = vadd.f32 %v3601_v30, %v1738_v46 }
 0x1c8   :  { %v3634_v50 = vpop.f32.mrb[12].mxu0 }
 0x1c9   :  { %v3635_v4 = vpop.f32.mrb[13].mxu0 }
 0x1ca   :  { %v3636_v56 = vadd.f32 %v3635_v4, %v3634_v50 }
 0x1cc   :  { %v1954_v2 = vadd.f32 %v3636_v56, %v1842_v48 }
 0x1d1   :  { %v3669_v20 = vpop.f32.mrb[12].mxu1 }
 0x1d2   :  { %v3670_v63 = vpop.f32.mrb[13].mxu1 }
 0x1d3   :  { %v3671_v35 = vadd.f32 %v3670_v63, %v3669_v20 }
 0x1d5   :  { %v2186_v23 = vadd.f32 %v3671_v35, %v1954_v2 }
 0x1e8   :  { %v3704_v1 = vpop.f32.mrb[14].mxu0 }
 0x1e9   :  { %v3705_v13 = vpop.f32.mrb[15].mxu0 }
 0x1ea   :  { %v3706_v19 = vadd.f32 %v3705_v13, %v3704_v1 }
 0x1ec   :  { %v2324_v28 = vadd.f32 %v3706_v19, %v2186_v23 }
 0x1f1   :  { %v3739_v15 = vpop.f32.mrb[14].mxu1 }
 0x1f2   :  { %v3740_v29 = vpop.f32.mrb[15].mxu1 }
 0x1f3   :  { %v3741_v6 = vadd.f32 %v3740_v29, %v3739_v15 }
 0x1f5   :  { %v2432_v43 = vadd.f32 %v3741_v6, %v2324_v28 }
 0x208   :  { %v3774_v57 = vpop.f32.mrb[16].mxu0 }
 0x209   :  { %v3775_v39 = vpop.f32.mrb[17].mxu0 }
 0x20a   :  { %v3776_v61 = vadd.f32 %v3775_v39, %v3774_v57 }
 0x20c   :  { %v2600_v7 = vadd.f32 %v3776_v61, %v2432_v43 }
 0x211   :  { %v3809_v47 = vpop.f32.mrb[16].mxu1 }
 0x212   :  { %v3810_v54 = vpop.f32.mrb[17].mxu1 }
 0x213   :  { %v3811_v55 = vadd.f32 %v3810_v54, %v3809_v47 }
 0x215   :  { %v2704_v34 = vadd.f32 %v3811_v55, %v2600_v7 }
 0x21c   :  { %v3162_v27 = vpop.f32.mrb[18].mxu0 }
 0x21d   :  { %v3871_v11 = vpop.f32.mrb[19].mxu0 }
 0x225   :  { %v2937_v60 = vpop.f32.mrb[18].mxu1 }
 0x226   :  { %v4466_v36 = vadd.f32 %v2937_v60, %v2704_v34  ;;  %v3850_v58 = vpop.f32.mrb[19].mxu1 }
 0x228   :  { %v4467_v3 = vadd.f32 %v4466_v36, %v3162_v27 }
 0x22a   :  { %3167 = vst.msk [vmem:[#allocation2] sm:$0xff] %vm3166_vm2, %v4467_v3 }
 0x22b   :  { %4491 = shalt.err (!%p4488_p4)
}
 0x22c   :  { %s4492_s26 = scalar_lea.hbm %s6182_s2, 128 }
 0x22d   :  { %p4493_p5 = scmp.ne.s32.totalorder %s6182_s2, %s4492_s26  ;;  %p4496_p6 = scmp.lt.u32.totalorder %s4492_s26, %s6182_s2 }
 0x22f   :  { %p4498_p7 = pnand %p4496_p6, %p4493_p5 }
 0x231   :  { %4501 = shalt.err (!%p4498_p7)
}
 0x232   :  { %3177 = dma.vmem_to_hbm [thread:$0]  %s3175_s1, 128, %s6182_s2, [#allocation3]  }
 0x233   :  { %4502 = dma.done.wait [#allocation3], 128  }
 0x234   :  { %4503 = vsyncadd [#allocation3], 4294967168 }
 0x235   :  { %3181 = vsyncpa [#allocation3], 1 }

</bundles_post_ra>
